<compile_context>
chip_gen: v6e
topology: v6e:2x2x1
jax: 0.10.0
libtpu: 0.0.40
codegen_flags: <defaults>
</compile_context>

<pallas_src>
import numpy as np
import jax
import jax.numpy as jnp
from jax import lax
from jax.experimental import pallas as pl
from jax.experimental.pallas import tpu as pltpu


# --------------------------------------------------------------------------
# Deterministic filter construction (numpy, mirrors the torch builders).
# --------------------------------------------------------------------------
def _dist_grid(shape):
    rows, cols = shape
    crow, ccol = rows // 2, cols // 2
    u = np.arange(rows, dtype=np.float64)[:, None]
    v = np.arange(cols, dtype=np.float64)[None, :]
    return (u - crow) ** 2 + (v - ccol) ** 2


def ideal_filter(shape, cutoff):
    d = np.sqrt(_dist_grid(shape))
    f = (d <= cutoff).astype(np.float64)
    return (f / f.sum()).astype(np.float32)


def butterworth_filter(shape, cutoff, order):
    d = np.sqrt(_dist_grid(shape))
    f = 1.0 / (1.0 + (d / cutoff) ** (2 * order))
    return (f / f.sum()).astype(np.float32)


def gaussian_filter(shape, cutoff):
    d2 = _dist_grid(shape)
    f = np.exp(-d2 / (2.0 * cutoff ** 2))
    return (f / f.sum()).astype(np.float32)


def sigmoid_filter(shape, cutoff, sharpness):
    d = np.sqrt(_dist_grid(shape))
    f = 1.0 / (1.0 + np.exp((d - cutoff) / sharpness))
    return (f / f.sum()).astype(np.float32)


# --------------------------------------------------------------------------
# Bicubic resize matrices (PyTorch bicubic: a=-0.75, align_corners=False,
# clamped border indices).
# --------------------------------------------------------------------------
def _cubic_weight(x, a=-0.75):
    x = np.abs(x)
    w1 = (a + 2.0) * x ** 3 - (a + 3.0) * x ** 2 + 1.0
    w2 = a * x ** 3 - 5.0 * a * x ** 2 + 8.0 * a * x - 4.0 * a
    return np.where(x <= 1.0, w1, np.where(x < 2.0, w2, 0.0))


def bicubic_resize_matrix(in_size, out_size):
    scale = in_size / out_size
    dst = np.arange(out_size, dtype=np.float64)
    src = (dst + 0.5) * scale - 0.5
    src_floor = np.floor(src).astype(np.int64)
    t = src - src_floor
    M = np.zeros((out_size, in_size), dtype=np.float64)
    for i in range(out_size):
        for k in range(-1, 3):
            idx = int(np.clip(src_floor[i] + k, 0, in_size - 1))
            M[i, idx] += _cubic_weight(k - t[i])
    return M  # float64, (out_size, in_size)


def _round_up(x, m):
    return ((x + m - 1) // m) * m


def _largest_divisor_leq(n, cap):
    cap = int(max(1, min(n, cap)))
    for d in range(cap, 0, -1):
        if n % d == 0:
            return d
    return 1


# --------------------------------------------------------------------------
# Pallas kernel: per grid step, TC planes. One MXU matmul (W-bicubic upsample),
# then separable conv via K lane-shifted taps (W) and K sublane-shifted taps (H)
# against zero-halo VMEM scratch, all vectorized over the TC planes.
# --------------------------------------------------------------------------
def _make_kernel(TC, H, W, Ha, Wa, WL, L0, Hpad, P0, K, p, R, u_fac, v_fac, wlp):
    u = np.asarray(u_fac, np.float64)   # (K, R)  H-direction tap weights
    v = np.asarray(v_fac, np.float64)   # (R, K)  W-direction tap weights

    def kernel(lrh_ref, sr_ref, mw_ref, out_ref, wbuf, tpad, acc):
        # lrh_ref : (TC, Ha, wlp)   H-bicubic'd LR rows (zero rows at/above H, zero cols >= wl)
        # sr_ref  : (TC, H, W)      unpadded SR block (block == full H, W)
        # mw_ref  : (wlp, Wa)       (W-direction bicubic)^T, zero-padded
        # out_ref : (TC, H, W)      unpadded output block
        # wbuf    : (TC, Ha, WL)    lane-halo scratch holding d = lr_up - sr (interior at L0)
        # tpad    : (TC, Hpad, Wa)  sublane-halo scratch for the per-rank W-conv result
        # acc     : (TC, Ha, Wa)    aligned conv accumulator
        f32 = jnp.float32

        # Zero the halo / padding regions every step.  Scratch is per-core and is not
        # guaranteed initialized, so a program_id()==0 init would be wrong when the
        # "parallel" grid axis is sharded across TensorCores.  Cost: a few % of a plane.
        wbuf[:, :, :L0] = jnp.zeros((TC, Ha, L0), f32)
        wbuf[:, :, L0 + W:] = jnp.zeros((TC, Ha, WL - L0 - W), f32)
        if Ha > H:
            wbuf[:, H:, :] = jnp.zeros((TC, Ha - H, WL), f32)
        tpad[:, :P0, :] = jnp.zeros((TC, P0, Wa), f32)
        tpad[:, P0 + Ha:, :] = jnp.zeros((TC, Hpad - P0 - Ha, Wa), f32)

        sr = sr_ref[...]                                   # (TC, H, W)
        wbuf[:, :H, L0:L0 + W] = sr                        # sr into the interior

        # One rank-independent MXU matmul: W-direction bicubic upsample of the LR rows.
        lr_up = jnp.dot(
            lrh_ref[...].reshape(TC * Ha, wlp), mw_ref[...],
            preferred_element_type=jnp.float32).reshape(TC, Ha, Wa)
        # d = lr_up - sr (interior); margins / padding rows & cols stay exactly zero.
        wbuf[:, :, L0:L0 + Wa] = lr_up - wbuf[:, :, L0:L0 + Wa]

        wrote = False
        for r in range(R):
            # W-direction conv: K static lane-shifted taps, compile-time weights.
            t = None
            for k in range(K):
                wk = float(v[r, k])
                if wk == 0.0:
                    continue
                a = L0 - p + k
                term = wk * wbuf[:, :, a:a + Wa]
                t = term if t is None else t + term
            if t is None:
                continue
            tpad[:, P0:P0 + Ha, :] = t                     # sublane-ALIGNED interior store
            # H-direction conv: K sublane-shifted taps from the zero-halo scratch.
            for k in range(K):
                wk = float(u[k, r])
                if wk == 0.0:
                    continue
                a = P0 - p + k
                term = wk * tpad[:, a:a + Ha, :]
                if wrote:
                    acc[...] += term
                else:
                    acc[...] = term
                    wrote = True
        if not wrote:
            acc[...] = jnp.zeros((TC, Ha, Wa), f32)

        out_ref[...] = sr + acc[:, :H, :W]

    return kernel


class CNNHardConstraintPallas:
    def __init__(self, filter_method, filter_hyperparameters, scale_factor,
                 in_channels, out_channels=(0, 1, 2, 3, 4, 5)):
        self.filter_method = filter_method
        self.in_channels = in_channels
        self.out_channels = list(out_channels)
        hp = filter_hyperparameters or {}
        self.kernel_size = scale_factor * 3 + 1
        cutoff = scale_factor * 2
        K = self.kernel_size
        if filter_method == "ideal":
            w = ideal_filter((K, K), cutoff)
        elif filter_method == "butterworth":
            w = butterworth_filter((K, K), cutoff, hp.get("order", 2))
        elif filter_method == "gaussian":
            w = gaussian_filter((K, K), cutoff)
        elif filter_method == "sigmoid":
            w = sigmoid_filter((K, K), cutoff, hp.get("sharpness", 1.0))
        else:
            raise ValueError(f"Unsupported filter_method: {filter_method}")
        self.weight = w  # (K, K) f32, same filter per channel (depthwise)

        # Exact separable / low-rank decomposition: w = sum_r u[:, r] (x) v[r, :].
        # gaussian -> rank 1; non-separable radial filters keep their numerical rank.
        U, S, Vt = np.linalg.svd(w.astype(np.float64))
        R = max(1, int(np.sum(S > S[0] * 1e-7)))
        self.rank = R
        self.u_fac = U[:, :R] * S[None, :R]  # (K, R)  H-direction tap weights
        self.v_fac = Vt[:R, :]               # (R, K)  W-direction tap weights

    def __call__(self, lr, sr):
        lr = jnp.asarray(lr, jnp.float32)
        sr = jnp.asarray(sr, jnp.float32)
        lr_sel = lr[:, jnp.asarray(self.out_channels)]
        N, C, hl, wl = lr_sel.shape
        Ns, Cs, H, W = sr.shape
        K = self.kernel_size
        p = K // 2
        R = self.rank
        NC = N * C

        # Aligned extents / scratch geometry.
        Ha = _round_up(H, 8)
        Wa = _round_up(W, 128)
        wlp = _round_up(wl, 128)              # lane-dense contraction dim for the matmul
        L0 = 128                              # lane offset of the interior inside wbuf
        WL = L0 + Wa + 128                    # 128-lane zero margins on both sides (>= p)
        P0 = _round_up(p, 8)                  # sublane-aligned interior offset in tpad
        Hpad = _round_up(P0 + Ha + p, 8)

        # ---- operators (numpy, compile-time constants / small operands) ----
        Mh = bicubic_resize_matrix(hl, H)     # (H, hl)
        Mw = bicubic_resize_matrix(wl, W)     # (W, wl)
        Mh_pad = np.zeros((Ha, hl), np.float64)
        Mh_pad[:H] = Mh
        MwT = np.zeros((wlp, Wa), np.float32)
        MwT[:wl, :W] = Mw.T.astype(np.float32)

        # ---- generation-aware VMEM budget and planes-per-step (TC) selection ----
        try:
            cap = int(pltpu.get_tpu_info().vmem_capacity_bytes)
        except Exception:
            cap = 64 << 20                    # v7x per-TC capacity; conservative fallback
        budget = min(cap - (16 << 20), (cap * 3) // 4)
        H8, W128 = _round_up(H, 8), _round_up(W, 128)
        per_plane = 4 * (Ha * WL + Hpad * Wa + Ha * Wa   # wbuf / tpad / acc scratch
                         + 2 * Ha * wlp                  # lrh (double-buffered)
                         + 4 * H8 * W128                 # sr + out pipeline buffers
                         + 3 * Ha * Wa)                  # in-kernel temporaries headroom
        const_bytes = 2 * wlp * Wa * 4                   # Mw^T (double-buffered)
        tc_fit = max(1, (budget - const_bytes) // per_plane)
        tc_cap = min(tc_fit, NC // 2) if NC >= 2 else 1  # keep grid >= 2 for megacore
        TC = _largest_divisor_leq(NC, max(1, tc_cap))
        grid = NC // TC

        # ---- glue: H-direction bicubic on the (scale x smaller) LR tensor only ----
        lrh = jnp.einsum("oh,nchw->ncow", jnp.asarray(Mh_pad, jnp.float32), lr_sel)
        if wlp != wl:
            lrh = jnp.pad(lrh, ((0, 0), (0, 0), (0, 0), (0, wlp - wl)))
        lrh = lrh.reshape(NC, Ha, wlp)
        sr3 = sr.reshape(NC, H, W)            # no HBM pad of sr; padding happens in VMEM
        mw = jnp.asarray(MwT)

        kernel = _make_kernel(TC, H, W, Ha, Wa, WL, L0, Hpad, P0, K, p, R,
                              self.u_fac, self.v_fac, wlp)

        nz = int(np.count_nonzero(self.v_fac)) + int(np.count_nonzero(self.u_fac))
        flops = NC * (2 * Ha * wlp * Wa + 2 * nz * Ha * Wa + Ha * Wa)
        bytes_accessed = 4 * (NC * (Ha * wlp + 2 * H * W) + wlp * Wa)
        need = const_bytes + TC * per_plane
        vmem_limit = int(min(max(need + (4 << 20), 32 << 20), cap - (2 << 20)))

        out3 = pl.pallas_call(
            kernel,
            out_shape=jax.ShapeDtypeStruct((NC, H, W), jnp.float32),
            grid=(grid,),
            in_specs=[
                pl.BlockSpec((TC, Ha, wlp), lambda i: (i, 0, 0)),
                pl.BlockSpec((TC, H, W), lambda i: (i, 0, 0)),
                pl.BlockSpec((wlp, Wa), lambda i: (0, 0)),
            ],
            out_specs=pl.BlockSpec((TC, H, W), lambda i: (i, 0, 0)),
            scratch_shapes=[
                pltpu.VMEM((TC, Ha, WL), jnp.float32),
                pltpu.VMEM((TC, Hpad, Wa), jnp.float32),
                pltpu.VMEM((TC, Ha, Wa), jnp.float32),
            ],
            compiler_params=pltpu.CompilerParams(
                dimension_semantics=("parallel",),
                vmem_limit_bytes=vmem_limit),
            cost_estimate=pl.CostEstimate(
                flops=int(flops), transcendentals=0,
                bytes_accessed=int(bytes_accessed)),
        )(lrh, sr3, mw)

        return out3.reshape(Ns, Cs, H, W)


# --------------------------------------------------------------------------
# Pure-JAX reference (lax depthwise conv + full bicubic) for verification.
# --------------------------------------------------------------------------
def _reference_forward(mod, lr, sr):
    lr = jnp.asarray(lr, jnp.float32)
    sr = jnp.asarray(sr, jnp.float32)
    lr_sel = lr[:, jnp.asarray(mod.out_channels)]
    _, C, hl, wl = lr_sel.shape
    _, _, H, W = sr.shape
    K = mod.kernel_size
    pad = K // 2
    Mh = jnp.asarray(bicubic_resize_matrix(hl, H), jnp.float32)
    Mw = jnp.asarray(bicubic_resize_matrix(wl, W), jnp.float32)
    lr_up = jnp.einsum("oh,nchw,pw->ncop", Mh, lr_sel, Mw)
    w = jnp.asarray(mod.weight)[None, None].repeat(C, axis=0)  # (C, 1, K, K)

    def dconv(x):
        return lax.conv_general_dilated(
            x, w, window_strides=(1, 1), padding=((pad, pad), (pad, pad)),
            dimension_numbers=("NCHW", "OIHW", "NCHW"), feature_group_count=C)

    return dconv(lr_up) + (sr - dconv(sr))


if __name__ == "__main__":
    key = jax.random.PRNGKey(0)
    k1, k2 = jax.random.split(key)

    scale_factor = 2
    in_channels = 4
    out_channels = [0, 1, 2, 3]          # select 4 of the 6 LR bands
    lr = jax.random.normal(k1, (2, 6, 8, 8), jnp.float32)    # low-res input
    sr = jax.random.normal(k2, (2, 4, 16, 16), jnp.float32)  # super-res input

    mod = CNNHardConstraintPallas(
        filter_method="gaussian",
        filter_hyperparameters={},
        scale_factor=scale_factor,
        in_channels=in_channels,
        out_channels=out_channels,
    )

    out = jax.block_until_ready(mod(lr, sr))
    ref = jax.block_until_ready(_reference_forward(mod, lr, sr))

    assert out.shape == sr.shape and out.dtype == jnp.float32
    np.testing.assert_allclose(np.asarray(out), np.asarray(ref), rtol=1e-4, atol=1e-5)
    print("KERNEL_OK")
</pallas_src>

<mosaic_0001>
module attributes {stable_mosaic.version = 11 : i64} {
  func.func @kernel(%arg0: i32, %arg1: memref<4x16x128xf32, #tpu.memory_space<vmem>>, %arg2: memref<4x16x16xf32, #tpu.memory_space<vmem>>, %arg3: memref<128x128xf32, #tpu.memory_space<vmem>>, %arg4: memref<4x16x16xf32, #tpu.memory_space<vmem>>, %arg5: memref<4x16x384xf32, #tpu.memory_space<vmem>>, %arg6: memref<4x32x128xf32, #tpu.memory_space<vmem>>, %arg7: memref<4x16x128xf32, #tpu.memory_space<vmem>>) attributes {dimension_semantics = [#tpu.dimension_semantics<parallel>], iteration_bounds = array<i64: 2>, scalar_prefetch = 0 : i64, scratch_operands = 3 : i64, tpu.core_type = #tpu.core_type<tc>, window_params = [{transform_indices = @transform_0, window_bounds = array<i64: 4, 16, 128>}, {transform_indices = @transform_1, window_bounds = array<i64: 4, 16, 16>}, {pipeline_mode = #tpu.pipeline_mode<synchronous>, transform_indices = @transform_2, window_bounds = array<i64: 128, 128>}, {transform_indices = @transform_3, window_bounds = array<i64: 4, 16, 16>}]} {
    %cst = arith.constant 0.000000e+00 : f32
    %0 = vector.broadcast %cst : f32 to vector<4x16x128xf32>
    %c0 = arith.constant 0 : index
    %c0_0 = arith.constant 0 : index
    %c0_1 = arith.constant 0 : index
    %1 = vector.load %arg5[%c0, %c0_0, %c0_1] : memref<4x16x384xf32, #tpu.memory_space<vmem>>, vector<4x16x128xf32>
    tpu.vector_store %arg5[%c0, %c0_0, %c0_1], %0 {strides = array<i32>} : memref<4x16x384xf32, #tpu.memory_space<vmem>>, vector<4x16x128xf32>,
    %cst_2 = arith.constant 0.000000e+00 : f32
    %2 = vector.broadcast %cst_2 : f32 to vector<4x16x240xf32>
    %c0_3 = arith.constant 0 : index
    %c0_4 = arith.constant 0 : index
    %c144 = arith.constant 144 : index
    %3 = vector.load %arg5[%c0_3, %c0_4, %c144] : memref<4x16x384xf32, #tpu.memory_space<vmem>>, vector<4x16x240xf32>
    tpu.vector_store %arg5[%c0_3, %c0_4, %c144], %2 {strides = array<i32>} : memref<4x16x384xf32, #tpu.memory_space<vmem>>, vector<4x16x240xf32>,
    %cst_5 = arith.constant 0.000000e+00 : f32
    %4 = vector.broadcast %cst_5 : f32 to vector<4x8x128xf32>
    %c0_6 = arith.constant 0 : index
    %c0_7 = arith.constant 0 : index
    %c0_8 = arith.constant 0 : index
    %5 = vector.load %arg6[%c0_6, %c0_7, %c0_8] : memref<4x32x128xf32, #tpu.memory_space<vmem>>, vector<4x8x128xf32>
    tpu.vector_store %arg6[%c0_6, %c0_7, %c0_8], %4 {strides = array<i32>} : memref<4x32x128xf32, #tpu.memory_space<vmem>>, vector<4x8x128xf32>,
    %cst_9 = arith.constant 0.000000e+00 : f32
    %6 = vector.broadcast %cst_9 : f32 to vector<4x8x128xf32>
    %c0_10 = arith.constant 0 : index
    %c24 = arith.constant 24 : index
    %c0_11 = arith.constant 0 : index
    %7 = vector.load %arg6[%c0_10, %c24, %c0_11] : memref<4x32x128xf32, #tpu.memory_space<vmem>>, vector<4x8x128xf32>
    tpu.vector_store %arg6[%c0_10, %c24, %c0_11], %6 {strides = array<i32>} : memref<4x32x128xf32, #tpu.memory_space<vmem>>, vector<4x8x128xf32>,
    %c0_12 = arith.constant 0 : index
    %c0_13 = arith.constant 0 : index
    %c0_14 = arith.constant 0 : index
    %8 = vector.load %arg2[%c0_12, %c0_13, %c0_14] : memref<4x16x16xf32, #tpu.memory_space<vmem>>, vector<4x16x16xf32>
    %c0_15 = arith.constant 0 : index
    %c0_16 = arith.constant 0 : index
    %c128 = arith.constant 128 : index
    %9 = vector.load %arg5[%c0_15, %c0_16, %c128] : memref<4x16x384xf32, #tpu.memory_space<vmem>>, vector<4x16x16xf32>
    tpu.vector_store %arg5[%c0_15, %c0_16, %c128], %8 {strides = array<i32>} : memref<4x16x384xf32, #tpu.memory_space<vmem>>, vector<4x16x16xf32>,
    %c0_17 = arith.constant 0 : index
    %c0_18 = arith.constant 0 : index
    %c0_19 = arith.constant 0 : index
    %10 = vector.load %arg1[%c0_17, %c0_18, %c0_19] : memref<4x16x128xf32, #tpu.memory_space<vmem>>, vector<4x16x128xf32>
    %11 = vector.shape_cast %10 : vector<4x16x128xf32> to vector<64x128xf32>
    %c0_20 = arith.constant 0 : index
    %c0_21 = arith.constant 0 : index
    %12 = vector.load %arg3[%c0_20, %c0_21] : memref<128x128xf32, #tpu.memory_space<vmem>>, vector<128x128xf32>
    %cst_22 = arith.constant dense<0.000000e+00> : vector<64x128xf32>
    %13 = tpu.matmul %11, %12, %cst_22 {dimension_numbers = #tpu.dot_dimension_numbers<[1], [0], [0], [1], [0, 0, 1, 1], [], []>} : vector<64x128xf32>, vector<128x128xf32>, vector<64x128xf32> -> vector<64x128xf32>
    %14 = vector.shape_cast %13 : vector<64x128xf32> to vector<4x16x128xf32>
    %c0_23 = arith.constant 0 : index
    %c0_24 = arith.constant 0 : index
    %c128_25 = arith.constant 128 : index
    %15 = vector.load %arg5[%c0_23, %c0_24, %c128_25] : memref<4x16x384xf32, #tpu.memory_space<vmem>>, vector<4x16x128xf32>
    %16 = arith.subf %14, %15 : vector<4x16x128xf32>
    %c0_26 = arith.constant 0 : index
    %c0_27 = arith.constant 0 : index
    %c128_28 = arith.constant 128 : index
    %17 = vector.load %arg5[%c0_26, %c0_27, %c128_28] : memref<4x16x384xf32, #tpu.memory_space<vmem>>, vector<4x16x128xf32>
    tpu.vector_store %arg5[%c0_26, %c0_27, %c128_28], %16 {strides = array<i32>} : memref<4x16x384xf32, #tpu.memory_space<vmem>>, vector<4x16x128xf32>,
    %c0_29 = arith.constant 0 : index
    %c0_30 = arith.constant 0 : index
    %c125 = arith.constant 125 : index
    %18 = vector.load %arg5[%c0_29, %c0_30, %c125] : memref<4x16x384xf32, #tpu.memory_space<vmem>>, vector<4x16x128xf32>
    %cst_31 = arith.constant -0.319663882 : f32
    %19 = vector.broadcast %cst_31 : f32 to vector<4x16x128xf32>
    %20 = arith.mulf %19, %18 : vector<4x16x128xf32>
    %c0_32 = arith.constant 0 : index
    %c0_33 = arith.constant 0 : index
    %c126 = arith.constant 126 : index
    %21 = vector.load %arg5[%c0_32, %c0_33, %c126] : memref<4x16x384xf32, #tpu.memory_space<vmem>>, vector<4x16x128xf32>
    %cst_34 = arith.constant -0.373724937 : f32
    %22 = vector.broadcast %cst_34 : f32 to vector<4x16x128xf32>
    %23 = arith.mulf %22, %21 : vector<4x16x128xf32>
    %24 = arith.addf %20, %23 : vector<4x16x128xf32>
    %c0_35 = arith.constant 0 : index
    %c0_36 = arith.constant 0 : index
    %c127 = arith.constant 127 : index
    %25 = vector.load %arg5[%c0_35, %c0_36, %c127] : memref<4x16x384xf32, #tpu.memory_space<vmem>>, vector<4x16x128xf32>
    %cst_37 = arith.constant -0.410456538 : f32
    %26 = vector.broadcast %cst_37 : f32 to vector<4x16x128xf32>
    %27 = arith.mulf %26, %25 : vector<4x16x128xf32>
    %28 = arith.addf %24, %27 : vector<4x16x128xf32>
    %c0_38 = arith.constant 0 : index
    %c0_39 = arith.constant 0 : index
    %c128_40 = arith.constant 128 : index
    %29 = vector.load %arg5[%c0_38, %c0_39, %c128_40] : memref<4x16x384xf32, #tpu.memory_space<vmem>>, vector<4x16x128xf32>
    %cst_41 = arith.constant -0.423485816 : f32
    %30 = vector.broadcast %cst_41 : f32 to vector<4x16x128xf32>
    %31 = arith.mulf %30, %29 : vector<4x16x128xf32>
    %32 = arith.addf %28, %31 : vector<4x16x128xf32>
    %c0_42 = arith.constant 0 : index
    %c0_43 = arith.constant 0 : index
    %c129 = arith.constant 129 : index
    %33 = vector.load %arg5[%c0_42, %c0_43, %c129] : memref<4x16x384xf32, #tpu.memory_space<vmem>>, vector<4x16x128xf32>
    %cst_44 = arith.constant -0.410456538 : f32
    %34 = vector.broadcast %cst_44 : f32 to vector<4x16x128xf32>
    %35 = arith.mulf %34, %33 : vector<4x16x128xf32>
    %36 = arith.addf %32, %35 : vector<4x16x128xf32>
    %c0_45 = arith.constant 0 : index
    %c0_46 = arith.constant 0 : index
    %c130 = arith.constant 130 : index
    %37 = vector.load %arg5[%c0_45, %c0_46, %c130] : memref<4x16x384xf32, #tpu.memory_space<vmem>>, vector<4x16x128xf32>
    %cst_47 = arith.constant -0.373724937 : f32
    %38 = vector.broadcast %cst_47 : f32 to vector<4x16x128xf32>
    %39 = arith.mulf %38, %37 : vector<4x16x128xf32>
    %40 = arith.addf %36, %39 : vector<4x16x128xf32>
    %c0_48 = arith.constant 0 : index
    %c0_49 = arith.constant 0 : index
    %c131 = arith.constant 131 : index
    %41 = vector.load %arg5[%c0_48, %c0_49, %c131] : memref<4x16x384xf32, #tpu.memory_space<vmem>>, vector<4x16x128xf32>
    %cst_50 = arith.constant -0.319663882 : f32
    %42 = vector.broadcast %cst_50 : f32 to vector<4x16x128xf32>
    %43 = arith.mulf %42, %41 : vector<4x16x128xf32>
    %44 = arith.addf %40, %43 : vector<4x16x128xf32>
    %c0_51 = arith.constant 0 : index
    %c8 = arith.constant 8 : index
    %c0_52 = arith.constant 0 : index
    %45 = vector.load %arg6[%c0_51, %c8, %c0_52] : memref<4x32x128xf32, #tpu.memory_space<vmem>>, vector<4x16x128xf32>
    tpu.vector_store %arg6[%c0_51, %c8, %c0_52], %44 {strides = array<i32>} : memref<4x32x128xf32, #tpu.memory_space<vmem>>, vector<4x16x128xf32>,
    %c0_53 = arith.constant 0 : index
    %c5 = arith.constant 5 : index
    %c0_54 = arith.constant 0 : index
    %46 = vector.load %arg6[%c0_53, %c5, %c0_54] : memref<4x32x128xf32, #tpu.memory_space<vmem>>, vector<4x16x128xf32>
    %cst_55 = arith.constant -0.0461735837 : f32
    %47 = vector.broadcast %cst_55 : f32 to vector<4x16x128xf32>
    %48 = arith.mulf %47, %46 : vector<4x16x128xf32>
    %c0_56 = arith.constant 0 : index
    %c0_57 = arith.constant 0 : index
    %c0_58 = arith.constant 0 : index
    %49 = vector.load %arg7[%c0_56, %c0_57, %c0_58] : memref<4x16x128xf32, #tpu.memory_space<vmem>>, vector<4x16x128xf32>
    tpu.vector_store %arg7[%c0_56, %c0_57, %c0_58], %48 {strides = array<i32>} : memref<4x16x128xf32, #tpu.memory_space<vmem>>, vector<4x16x128xf32>,
    %c0_59 = arith.constant 0 : index
    %c6 = arith.constant 6 : index
    %c0_60 = arith.constant 0 : index
    %50 = vector.load %arg6[%c0_59, %c6, %c0_60] : memref<4x32x128xf32, #tpu.memory_space<vmem>>, vector<4x16x128xf32>
    %cst_61 = arith.constant -0.0539823882 : f32
    %51 = vector.broadcast %cst_61 : f32 to vector<4x16x128xf32>
    %52 = arith.mulf %51, %50 : vector<4x16x128xf32>
    %c0_62 = arith.constant 0 : index
    %c0_63 = arith.constant 0 : index
    %c0_64 = arith.constant 0 : index
    %53 = vector.load %arg7[%c0_62, %c0_63, %c0_64] : memref<4x16x128xf32, #tpu.memory_space<vmem>>, vector<4x16x128xf32>
    %54 = arith.addf %53, %52 : vector<4x16x128xf32>
    %c0_65 = arith.constant 0 : index
    %c0_66 = arith.constant 0 : index
    %c0_67 = arith.constant 0 : index
    %55 = vector.load %arg7[%c0_65, %c0_66, %c0_67] : memref<4x16x128xf32, #tpu.memory_space<vmem>>, vector<4x16x128xf32>
    tpu.vector_store %arg7[%c0_65, %c0_66, %c0_67], %54 {strides = array<i32>} : memref<4x16x128xf32, #tpu.memory_space<vmem>>, vector<4x16x128xf32>,
    %c0_68 = arith.constant 0 : index
    %c7 = arith.constant 7 : index
    %c0_69 = arith.constant 0 : index
    %56 = vector.load %arg6[%c0_68, %c7, %c0_69] : memref<4x32x128xf32, #tpu.memory_space<vmem>>, vector<4x16x128xf32>
    %cst_70 = arith.constant -0.0592880584 : f32
    %57 = vector.broadcast %cst_70 : f32 to vector<4x16x128xf32>
    %58 = arith.mulf %57, %56 : vector<4x16x128xf32>
    %c0_71 = arith.constant 0 : index
    %c0_72 = arith.constant 0 : index
    %c0_73 = arith.constant 0 : index
    %59 = vector.load %arg7[%c0_71, %c0_72, %c0_73] : memref<4x16x128xf32, #tpu.memory_space<vmem>>, vector<4x16x128xf32>
    %60 = arith.addf %59, %58 : vector<4x16x128xf32>
    %c0_74 = arith.constant 0 : index
    %c0_75 = arith.constant 0 : index
    %c0_76 = arith.constant 0 : index
    %61 = vector.load %arg7[%c0_74, %c0_75, %c0_76] : memref<4x16x128xf32, #tpu.memory_space<vmem>>, vector<4x16x128xf32>
    tpu.vector_store %arg7[%c0_74, %c0_75, %c0_76], %60 {strides = array<i32>} : memref<4x16x128xf32, #tpu.memory_space<vmem>>, vector<4x16x128xf32>,
    %c0_77 = arith.constant 0 : index
    %c8_78 = arith.constant 8 : index
    %c0_79 = arith.constant 0 : index
    %62 = vector.load %arg6[%c0_77, %c8_78, %c0_79] : memref<4x32x128xf32, #tpu.memory_space<vmem>>, vector<4x16x128xf32>
    %cst_80 = arith.constant -0.0611700602 : f32
    %63 = vector.broadcast %cst_80 : f32 to vector<4x16x128xf32>
    %64 = arith.mulf %63, %62 : vector<4x16x128xf32>
    %c0_81 = arith.constant 0 : index
    %c0_82 = arith.constant 0 : index
    %c0_83 = arith.constant 0 : index
    %65 = vector.load %arg7[%c0_81, %c0_82, %c0_83] : memref<4x16x128xf32, #tpu.memory_space<vmem>>, vector<4x16x128xf32>
    %66 = arith.addf %65, %64 : vector<4x16x128xf32>
    %c0_84 = arith.constant 0 : index
    %c0_85 = arith.constant 0 : index
    %c0_86 = arith.constant 0 : index
    %67 = vector.load %arg7[%c0_84, %c0_85, %c0_86] : memref<4x16x128xf32, #tpu.memory_space<vmem>>, vector<4x16x128xf32>
    tpu.vector_store %arg7[%c0_84, %c0_85, %c0_86], %66 {strides = array<i32>} : memref<4x16x128xf32, #tpu.memory_space<vmem>>, vector<4x16x128xf32>,
    %c0_87 = arith.constant 0 : index
    %c9 = arith.constant 9 : index
    %c0_88 = arith.constant 0 : index
    %68 = vector.load %arg6[%c0_87, %c9, %c0_88] : memref<4x32x128xf32, #tpu.memory_space<vmem>>, vector<4x16x128xf32>
    %cst_89 = arith.constant -0.0592880584 : f32
    %69 = vector.broadcast %cst_89 : f32 to vector<4x16x128xf32>
    %70 = arith.mulf %69, %68 : vector<4x16x128xf32>
    %c0_90 = arith.constant 0 : index
    %c0_91 = arith.constant 0 : index
    %c0_92 = arith.constant 0 : index
    %71 = vector.load %arg7[%c0_90, %c0_91, %c0_92] : memref<4x16x128xf32, #tpu.memory_space<vmem>>, vector<4x16x128xf32>
    %72 = arith.addf %71, %70 : vector<4x16x128xf32>
    %c0_93 = arith.constant 0 : index
    %c0_94 = arith.constant 0 : index
    %c0_95 = arith.constant 0 : index
    %73 = vector.load %arg7[%c0_93, %c0_94, %c0_95] : memref<4x16x128xf32, #tpu.memory_space<vmem>>, vector<4x16x128xf32>
    tpu.vector_store %arg7[%c0_93, %c0_94, %c0_95], %72 {strides = array<i32>} : memref<4x16x128xf32, #tpu.memory_space<vmem>>, vector<4x16x128xf32>,
    %c0_96 = arith.constant 0 : index
    %c10 = arith.constant 10 : index
    %c0_97 = arith.constant 0 : index
    %74 = vector.load %arg6[%c0_96, %c10, %c0_97] : memref<4x32x128xf32, #tpu.memory_space<vmem>>, vector<4x16x128xf32>
    %cst_98 = arith.constant -0.0539823882 : f32
    %75 = vector.broadcast %cst_98 : f32 to vector<4x16x128xf32>
    %76 = arith.mulf %75, %74 : vector<4x16x128xf32>
    %c0_99 = arith.constant 0 : index
    %c0_100 = arith.constant 0 : index
    %c0_101 = arith.constant 0 : index
    %77 = vector.load %arg7[%c0_99, %c0_100, %c0_101] : memref<4x16x128xf32, #tpu.memory_space<vmem>>, vector<4x16x128xf32>
    %78 = arith.addf %77, %76 : vector<4x16x128xf32>
    %c0_102 = arith.constant 0 : index
    %c0_103 = arith.constant 0 : index
    %c0_104 = arith.constant 0 : index
    %79 = vector.load %arg7[%c0_102, %c0_103, %c0_104] : memref<4x16x128xf32, #tpu.memory_space<vmem>>, vector<4x16x128xf32>
    tpu.vector_store %arg7[%c0_102, %c0_103, %c0_104], %78 {strides = array<i32>} : memref<4x16x128xf32, #tpu.memory_space<vmem>>, vector<4x16x128xf32>,
    %c0_105 = arith.constant 0 : index
    %c11 = arith.constant 11 : index
    %c0_106 = arith.constant 0 : index
    %80 = vector.load %arg6[%c0_105, %c11, %c0_106] : memref<4x32x128xf32, #tpu.memory_space<vmem>>, vector<4x16x128xf32>
    %cst_107 = arith.constant -0.0461735837 : f32
    %81 = vector.broadcast %cst_107 : f32 to vector<4x16x128xf32>
    %82 = arith.mulf %81, %80 : vector<4x16x128xf32>
    %c0_108 = arith.constant 0 : index
    %c0_109 = arith.constant 0 : index
    %c0_110 = arith.constant 0 : index
    %83 = vector.load %arg7[%c0_108, %c0_109, %c0_110] : memref<4x16x128xf32, #tpu.memory_space<vmem>>, vector<4x16x128xf32>
    %84 = arith.addf %83, %82 : vector<4x16x128xf32>
    %c0_111 = arith.constant 0 : index
    %c0_112 = arith.constant 0 : index
    %c0_113 = arith.constant 0 : index
    %85 = vector.load %arg7[%c0_111, %c0_112, %c0_113] : memref<4x16x128xf32, #tpu.memory_space<vmem>>, vector<4x16x128xf32>
    tpu.vector_store %arg7[%c0_111, %c0_112, %c0_113], %84 {strides = array<i32>} : memref<4x16x128xf32, #tpu.memory_space<vmem>>, vector<4x16x128xf32>,
    %c0_114 = arith.constant 0 : index
    %c0_115 = arith.constant 0 : index
    %c0_116 = arith.constant 0 : index
    %86 = vector.load %arg7[%c0_114, %c0_115, %c0_116] : memref<4x16x128xf32, #tpu.memory_space<vmem>>, vector<4x16x16xf32>
    %87 = arith.addf %8, %86 : vector<4x16x16xf32>
    %c0_117 = arith.constant 0 : index
    %c0_118 = arith.constant 0 : index
    %c0_119 = arith.constant 0 : index
    %88 = vector.load %arg4[%c0_117, %c0_118, %c0_119] : memref<4x16x16xf32, #tpu.memory_space<vmem>>, vector<4x16x16xf32>
    tpu.vector_store %arg4[%c0_117, %c0_118, %c0_119], %87 {strides = array<i32>} : memref<4x16x16xf32, #tpu.memory_space<vmem>>, vector<4x16x16xf32>,
    return
  }
  func.func @transform_0(%arg0: i32) -> (i32, i32, i32) {
    %c0_i32 = arith.constant 0 : i32
    %c0_i32_0 = arith.constant 0 : i32
    %c0_i32_1 = arith.constant 0 : i32
    return %arg0, %c0_i32, %c0_i32_0 : i32, i32, i32
  }
  func.func @transform_1(%arg0: i32) -> (i32, i32, i32) {
    %c0_i32 = arith.constant 0 : i32
    %c0_i32_0 = arith.constant 0 : i32
    %c0_i32_1 = arith.constant 0 : i32
    return %arg0, %c0_i32, %c0_i32_0 : i32, i32, i32
  }
  func.func @transform_2(%arg0: i32) -> (i32, i32) {
    %c0_i32 = arith.constant 0 : i32
    %c0_i32_0 = arith.constant 0 : i32
    %c0_i32_1 = arith.constant 0 : i32
    return %c0_i32, %c0_i32_0 : i32, i32
  }
  func.func @transform_3(%arg0: i32) -> (i32, i32, i32) {
    %c0_i32 = arith.constant 0 : i32
    %c0_i32_0 = arith.constant 0 : i32
    %c0_i32_1 = arith.constant 0 : i32
    return %arg0, %c0_i32, %c0_i32_0 : i32, i32, i32
  }
}

</mosaic_0001>

<bundles_post_ra>
// kernel: tpu_custom_call.1
= control target key start
LH: loop header
LB: loop body
LE: loop exit
PB: predicated region body
PF: predicated region fallthrough
CT: control target
= control target key end

     0   :  { %s2667_s0 = inlined_call_operand.hbm [shape: f32[8,16,128], index: 0, kind: input, shape index: {}]   ;;  %s2668_s1 = inlined_call_operand.hbm [shape: f32[8,16,16], index: 1, kind: input, shape index: {}]   ;;  %s2669_s2 = inlined_call_operand.hbm [shape: f32[128,128], index: 2, kind: input, shape index: {}]   ;;  %s2670_s3 = inlined_call_operand.hbm [shape: f32[8,16,16], index: 3, kind: output, shape index: {}]  }
   0x1   :  { %2686 = sst [smem:[#allocation28_spill]] %s2667_s0 }
   0x2   :  { %2687 = sst [smem:[#allocation29_spill]] %s2669_s2 }
   0x3   :  { %8 = vsyncpa [#allocation6], 0 }
   0x4   :  { %10 = vsyncpa [#allocation6 + $0x1], 0 }
   0x5   :  { %11 = vsyncpa [#allocation9], 0 }
   0x6   :  { %13 = vsyncpa [#allocation9 + $0x1], 0 }
   0x7   :  { %14 = vsyncpa [#allocation7], 0 }
   0x8   :  { %16 = vsyncpa [#allocation7 + $0x1], 0  ;;  %s1957_s12 = smov 0   ;;  %s1959_s13 = smov 0  }
   0x9   :  { %s1961_s14 = smov 0   ;;  %s1963_s15 = smov 0  }
   0xa LB: > { %s1978_s16 = sadd.s32 4294967295, %s1918_s15   ;;  %s1561_s17 = sadd.s32 4294967294, %s1918_s15   ;;  %s1918_s15 = sphi %s1963_s15, %s2732_s15   ;;  %s1914_s14 = sphi %s1961_s14, %s2731_s14   ;;  %s1910_s13 = sphi %s1959_s13, %s2730_s13   ;;  %s1906_s12 = sphi %s1957_s12, %s2729_s12  }
   0xb   : > { %p42_p0 = scmp.ne.s32.totalorder %s1910_s13, %s1906_s12  ;;  %p2675_p1 = scmp.eq.s32.totalorder %s1978_s16, 0 }
   0xc   : > { %p119_p3 = scmp.eq.s32.totalorder %s1561_s17, 1  ;;  %p1562_p5 = scmp.ge.s32.totalorder %s1918_s15, 1 }
   0xd   : > { %p1987_p4 = por %p2675_p1, %p42_p0  ;;  %p126_p7 = scmp.lt.s32.totalorder %s1918_s15, 3 }
   0xe   : > { %p1992_p6 = por %p119_p3, %p42_p0  ;;  %s1920_s21 = smov [#allocation10]  }
   0xf   : > { %s2688_s18 = scalar_select %p1987_p4, 1, 0 }
  0x10   : > { %s2689_s19 = scalar_select %p1992_p6, 1, 0 }
  0x11   : > { %p1997_p8 = pnand %p1562_p5, %p126_p7  ;;  %s138_s22 = sshll.u32 %s1920_s21, 4  ;;  %s139_s22 = int_to_ptr.vmem [resolvable:$true] %s138_s22 }
  0x12   : > { %s2011_s24 = sadd.s32 1, %s1918_s15   ;;  %s29_s25 = sadd.s32 1, %s1914_s14 }
  0x13   : > { %p1700_p9 = pneg %p1997_p8  ;;  %s26_s26 = ssub.s32 %s1918_s15, %s2011_s24 }
  0x14   : > { %s1775_s27 = scalar_lea.vmem %s139_s22, 2048  ;;  %p1783_p5 = scmp.lt.s32.totalorder %s139_s22, %s139_s22 }
  0x15   : > { %p2006_p11 = pnand %p1700_p9, %p2675_p1  ;;  %p1776_p13 = scmp.ne.s32.totalorder %s139_s22, %s1775_s27 }
  0x16   : > { %p1784_p7 = scmp.lt.s32.totalorder %s1775_s27, %s1775_s27 }
  0x17   : > { %p1766_p12 = pneg %p2006_p11 }
  0x18   : > { %p1785_p10 = por %p1784_p7, %p1783_p5 }
  0x19   : > { %p1778_p0 = pnand %p1776_p13, %p1766_p12 }
  0x1b   : > { %p1779_p3 = pneg %p1778_p0 }
  0x1d   : > { %p1786_p2 = pnand %p1785_p10, %p1779_p3 }
  0x1f   : > { %1789 = shalt.err (!%p1786_p2)
}
  0x20   : > { %s2671_s28 = smov 128   ;;  %s2673_s29 = smov 8  }
  0x21   : > { %s2692_s2 = sld [smem:[#allocation29_spill]]  ;;  %p27_p2 = scmp.eq.s32.totalorder %s26_s26, 0 }
  0x22   : > { %p36_p9 = scmp.ne.s32.totalorder %s1914_s14, %s1910_s13  ;;  %p37_p10 = scmp.eq.s32.totalorder %s1918_s15, 0 }
  0x23   : > { %p1716_p12 = scmp.lt.s32.totalorder %s1918_s15, 2  ;;  %p2693_p0 = scmp.eq.s32.totalorder %s1978_s16, 1 }
  0x24   : > { %s2031_s5 = scalar_select %p27_p2, %s1914_s14, %s29_s25  }
  0x25   : > { %p38_p13 = por %p37_p10, %p36_p9  ;;  %p2035_p3 = por %p2693_p0, %p36_p9 }
  0x26   : > { %s152_s7 = sand.u32 1, %s1914_s14   ;;  %s1585_s8 = sshll.u32 %s1918_s15, 10 }
  0x27   : > { %1703 = dma.hbm_to_vmem [thread:$0]  (!%p2006_p11), %s2692_s2, 2048, %s139_s22, [#allocation9], %s2671_s28, %s2671_s28, %s2673_s29  }
  0x28   : > { %s2694_s6 = scalar_select %p2035_p3, 1, 0 }
  0x29   : > { %s2041_s9 = sshll.u32 %s152_s7, 6  ;;  %s2695_s0 = sld [smem:[#allocation28_spill]] }
  0x2a   : > { %s156_s21 = scalar_lea.vmem [#allocation5], %s2041_s9  ;;  %p2049_p11 = pnand %p1716_p12, %p38_p13 }
  0x2b   : > { %s164_s22 = sshll.u32 %s156_s21, 4  ;;  %s2058_s27 = scalar_lea.hbm %s2668_s1, %s1585_s8  ;;  %s2053_s22 = int_to_ptr.vmem [resolvable:$true] %s164_s22 }
  0x2c   : > { %s2060_s30 = scalar_lea.sflag [#allocation6], %s152_s7  ;;  %p1792_p7 = pneg %p2049_p11 }
  0x2f   : > { %s2046_s17 = scalar_lea.hbm %s2695_s0, %s1585_s8  ;;  %s1795_s21 = scalar_lea.hbm %s2695_s0, 2048 }
  0x30   : > { %s1790_s4 = scalar_lea.hbm %s2046_s17, 1024  ;;  %p1796_p10 = scmp.lt.s32.totalorder %s2046_s17, %s2695_s0 }
  0x31   : > { %p1791_p5 = scmp.ne.s32.totalorder %s2046_s17, %s1790_s4  ;;  %p1797_p12 = scmp.lt.s32.totalorder %s1795_s21, %s1790_s4 }
  0x33   : > { %p1793_p2 = pnand %p1792_p7, %p1791_p5  ;;  %p1798_p13 = por %p1797_p12, %p1796_p10 }
  0x35   : > { %p1794_p9 = pneg %p1793_p2 }
  0x37   : > { %p1799_p0 = pnand %p1798_p13, %p1794_p9 }
  0x39   : > { %1802 = shalt.err (!%p1799_p0)
}
  0x3a   : > { %s1803_s7 = scalar_lea.vmem %s2053_s22, 1024  ;;  %s1923_s8 = smov [#allocation5]  }
  0x3b   : > { %p1804_p1 = scmp.ne.s32.totalorder %s2053_s22, %s1803_s7  ;;  %s1808_s25 = sshll.u32 %s1923_s8, 4  ;;  %s1809_s25 = int_to_ptr.vmem [resolvable:$false] %s1808_s25 }
  0x3c   : > { %s1810_s26 = scalar_lea.vmem %s1809_s25, 2048  ;;  %p1811_p6 = scmp.lt.s32.totalorder %s2053_s22, %s1809_s25 }
  0x3d   : > { %p1806_p5 = pnand %p1804_p1, %p1792_p7  ;;  %p1812_p3 = scmp.lt.s32.totalorder %s1810_s26, %s1803_s7 }
  0x3f   : > { %p1807_p2 = pneg %p1806_p5  ;;  %p1813_p4 = por %p1812_p3, %p1811_p6 }
  0x41   : > { %p1814_p10 = pnand %p1813_p4, %p1807_p2 }
  0x43   : > { %1817 = shalt.err (!%p1814_p10)
}
  0x44   : > { %s2697_s28 = smov 8   ;;  %s2698_s29 = smov 128  }
  0x45   : > { %1707 = dma.hbm_to_vmem [thread:$0]  (!%p2049_p11), %s2046_s17, 1024, %s2053_s22, %s2060_s30, %s2698_s29, %s2698_s29, %s2697_s28  }
  0x46   : > { %s178_s4 = scalar_lea.vmem [#allocation8], %s2041_s9  ;;  %s174_s11 = sand.u32 1, %s1918_s15  }
  0x47   : > { %s186_s10 = sshll.u32 %s178_s4, 4  ;;  %s175_s21 = scalar_lea.sflag [#allocation9], %s174_s11  ;;  %s2092_s10 = int_to_ptr.vmem [resolvable:$true] %s186_s10 }
  0x48   : > { %s1818_s7 = scalar_lea.hbm %s2058_s27, 1024  ;;  %s1823_s26 = scalar_lea.hbm %s2668_s1, 2048 }
  0x49   : > { %p1819_p1 = scmp.ne.s32.totalorder %s2058_s27, %s1818_s7  ;;  %p1824_p3 = scmp.lt.s32.totalorder %s2058_s27, %s2668_s1 }
  0x4a   : > { %p1825_p9 = scmp.lt.s32.totalorder %s1823_s26, %s1818_s7 }
  0x4b   : > { %p1821_p4 = pnand %p1819_p1, %p1792_p7 }
  0x4c   : > { %p1826_p12 = por %p1825_p9, %p1824_p3 }
  0x4d   : > { %p1822_p6 = pneg %p1821_p4 }
  0x4f   : > { %p1827_p13 = pnand %p1826_p12, %p1822_p6 }
  0x51   : > { %1830 = shalt.err (!%p1827_p13)
}
  0x52   : > { %s1831_s9 = scalar_lea.vmem %s2092_s10, 1024  ;;  %s1924_s17 = smov [#allocation8]  }
  0x53   : > { %p1832_p0 = scmp.ne.s32.totalorder %s2092_s10, %s1831_s9  ;;  %s1836_s22 = sshll.u32 %s1924_s17, 4  ;;  %s1837_s22 = int_to_ptr.vmem [resolvable:$false] %s1836_s22 }
  0x54   : > { %s1838_s30 = scalar_lea.vmem %s1837_s22, 2048  ;;  %p1839_p10 = scmp.lt.s32.totalorder %s2092_s10, %s1837_s22 }
  0x55   : > { %p1834_p5 = pnand %p1832_p0, %p1792_p7  ;;  %p1840_p1 = scmp.lt.s32.totalorder %s1838_s30, %s1831_s9 }
  0x57   : > { %p1835_p2 = pneg %p1834_p5  ;;  %p1841_p4 = por %p1840_p1, %p1839_p10 }
  0x59   : > { %p1842_p3 = pnand %p1841_p4, %p1835_p2 }
  0x5b   : > { %1845 = shalt.err (!%p1842_p3)
}
  0x5c   : > { %1710 = dma.hbm_to_vmem [thread:$0]  (!%p2049_p11), %s2058_s27, 1024, %s2092_s10, %s175_s21, %s2698_s29, %s2698_s29, %s2697_s28  }
  0x5d   : > { %198 = sbr.rel (%p1997_p8) target bundleno = 727 (0x2d7), region = 32 }
  0x62   : > { %s2122_s0 = sand.u32 1, %s1910_s13   ;;  %p2699_p7 = scmp.ne.s32.totalorder %s2688_s18, 0 }
  0x63   : > { %s2125_s2 = sshll.u32 %s2122_s0, 6  ;;  %s201_s4 = scalar_lea.sflag [#allocation6], %s2122_s0 }
  0x64   : > { %s2129_s23 = scalar_lea.vmem [#allocation5], %s2125_s2 }
  0x65   : > { %1889 = dma.done.wait (%p2699_p7), %s201_s4, 1024  }
  0x66   : > { %1891 = vsyncadd (%p2699_p7), %s201_s4, 4294966272  ;;  %s209_s20 = sand.u32 1, %s1978_s16   ;;  %s2137_s28 = scalar_lea.vmem [#allocation8], %s2125_s2 }
  0x67   : > { %s210_s27 = scalar_lea.sflag [#allocation9], %s209_s20 }
  0x68   : > { %1893 = dma.done.wait (%p2699_p7), %s210_s27, 1024  }
  0x69   : > { %1895 = vsyncadd (%p2699_p7), %s210_s27, 4294966272  ;;  %p2700_p8 = scmp.eq.s32.totalorder %s1978_s16, 0 }
  0x6b   : > { %1897 = dma.done.wait (%p2700_p8), [#allocation9], 2048   ;;  %p2701_p11 = pmov %p2700_p8 }
  0x6c   : > { %vm256_vm0 = vcmask 1047680   ;;  %v1925_v0 = vmov 0.0   ;;  %v1926_v1 = vmov -0.0   ;;  %s1927_s18 = smov 127   ;;  %v321_v2 = vld [vmem:[#allocation10 + $0x78] sm:$0xff]  ;;  %v320_v3 = vld [vmem:[#allocation10 + $0x70] sm:$0xff] }
  0x6d   : > { %1899 = vsyncadd (%p2701_p11), [#allocation9], 4294965248  ;;  %273 = vst [vmem:[#allocation3] sm:$0xff] %v1925_v0  ;;  %519 = vrot.lane.b32.xlu1 %v1926_v1, %s1927_s18  ;;  %515 = vrot.lane.b32.xlu0 %v1926_v1, %s1927_s18  ;;  %s1928_s29 = smov 124   ;;  %v319_v4 = vld [vmem:[#allocation10 + $0x68] sm:$0xff]  ;;  %v318_v5 = vld [vmem:[#allocation10 + $0x60] sm:$0xff] }
  0x6e   : > { %274 = vst [vmem:[#allocation3 + $0x20] sm:$0xff] %v1925_v0  ;;  %275 = vst [vmem:[#allocation3 + $0x40] sm:$0xff] %v1925_v0  ;;  %1614 = vmatprep.subr.mxu0 %v321_v2  ;;  %1658 = vmatprep.subr.mxu1 %v321_v2  ;;  %v317_v6 = vld [vmem:[#allocation10 + $0x58] sm:$0xff]  ;;  %vm289_vm1 = vcmask 130048   ;;  %v316_v7 = vld [vmem:[#allocation10 + $0x50] sm:$0xff]  ;;  %s1929_s10 = smov 126  }
  0x6f   : > { %276 = vst [vmem:[#allocation3 + $0x60] sm:$0xff] %v1925_v0  ;;  %277 = vst [vmem:[#allocation3 + $0x18] sm:$0xff] %v1925_v0  ;;  %1615 = vmatpush3.msra.mxu0 %v321_v2  ;;  %1674 = vmatpush3.msra.mxu1 %v321_v2  ;;  %v2164_v8 = vld [vmem:[%s2137_s28 + $0x8] sm:$0xff]  ;;  %v314_v10 = vld [vmem:[#allocation10 + $0x40] sm:$0xff]  ;;  %s1930_s11 = smov 123   ;;  %s1931_s21 = smov 122  }
  0x70   : > { %278 = vst [vmem:[#allocation3 + $0x38] sm:$0xff] %v1925_v0  ;;  %279 = vst [vmem:[#allocation3 + $0x58] sm:$0xff] %v1925_v0  ;;  %1616 = vmatprep.subr.mxu0 %v320_v3  ;;  %1659 = vmatprep.subr.mxu1 %v320_v3  ;;  %v315_v9 = vld [vmem:[#allocation10 + $0x48] sm:$0xff]  ;;  %v313_v11 = vld [vmem:[#allocation10 + $0x38] sm:$0xff]  ;;  %s1932_s7 = smov 125   ;;  %vm547_vm2 = vcmask 1039360  }
  0x71   : > { %280 = vst [vmem:[#allocation3 + $0x78] sm:$0xff] %v1925_v0  ;;  %259 = vst.msk [vmem:[#allocation2 + $0x20] sm:$0xff] %vm256_vm0, %v1925_v0  ;;  %799 = vrot.lane.b32.xlu1 %v1926_v1, %s1928_s29  ;;  %523 = vrot.lane.b32.xlu0 %v1926_v1, %s1927_s18  ;;  %v312_v12 = vld [vmem:[#allocation10 + $0x30] sm:$0xff]  ;;  %v311_v13 = vld [vmem:[#allocation10 + $0x28] sm:$0xff]  ;;  %vm652_vm3 = vcmask 1031168   ;;  %vm829_vm4 = vcmask 1014784  }
  0x72   : > { %257 = vst.msk [vmem:[#allocation2 + $0x8] sm:$0xff] %vm256_vm0, %v1925_v0  ;;  %261 = vst.msk [vmem:[#allocation2 + $0x38] sm:$0xff] %vm256_vm0, %v1925_v0  ;;  %1617 = vmatpush3.msra.mxu0 %v320_v3  ;;  %1675 = vmatpush3.msra.mxu1 %v320_v3  ;;  %v310_v14 = vld [vmem:[#allocation10 + $0x20] sm:$0xff]  ;;  %v309_v15 = vld [vmem:[#allocation10 + $0x18] sm:$0xff]  ;;  %vm934_vm5 = vcmask 1006592   ;;  %vm1039_vm6 = vcmask 998400  }
  0x73   : > { %263 = vst.msk [vmem:[#allocation2 + $0x50] sm:$0xff] %vm256_vm0, %v1925_v0  ;;  %265 = vst.msk [vmem:[#allocation2 + $0x68] sm:$0xff] %vm256_vm0, %v1925_v0  ;;  %1618 = vmatprep.subr.mxu0 %v319_v4  ;;  %1660 = vmatprep.subr.mxu1 %v319_v4  ;;  %v308_v16 = vld [vmem:[#allocation10 + $0x10] sm:$0xff]  ;;  %v307_v17 = vld [vmem:[#allocation10 + $0x8] sm:$0xff]  ;;  %s1933_s8 = smov 3   ;;  %vm1128_vm7 = vcmask 23552  }
  0x74   : > { %267 = vst.msk [vmem:[#allocation2 + $0x80] sm:$0xff] %vm256_vm0, %v1925_v0  ;;  %269 = vst.msk [vmem:[#allocation2 + $0x98] sm:$0xff] %vm256_vm0, %v1925_v0  ;;  %1619 = vmatpush3.msra.mxu0 %v319_v4  ;;  %1676 = vmatpush3.msra.mxu1 %v319_v4  ;;  %v306_v18 = vld [vmem:[#allocation10] sm:$0xff]  ;;  %v299_v20 = vld [vmem:[%s2129_s23 + $0x8] sm:$0xff]  ;;  %s2590_s25 = scalar_lea.vmem [#allocation11], %s2125_s2  ;;  %s1589_s26 = sshll.u32 %s1978_s16, 10 }
  0x75   : > { %271 = vst.msk [vmem:[#allocation2 + $0xb0] sm:$0xff] %vm256_vm0, %v1925_v0  ;;  %1620 = vmatprep.subr.mxu0 %v318_v5  ;;  %1661 = vmatprep.subr.mxu1 %v318_v5  ;;  %2702 = vst [vmem:[#allocation16_spill] sm:$0xff] %v2164_v8  ;;  %v298_v19 = vld [vmem:[%s2129_s23] sm:$0xff]  ;;  %v300_v22 = vld [vmem:[%s2129_s23 + $0x10] sm:$0xff]  ;;  %s1456_s9 = sshll.u32 %s2590_s25, 4  ;;  %s2617_s30 = scalar_lea.hbm %s2670_s3, %s1589_s26  ;;  %s2619_s9 = int_to_ptr.vmem [resolvable:$true] %s1456_s9 }
  0x76   : > { %1621 = vmatpush3.msra.mxu0 %v318_v5  ;;  %1677 = vmatpush3.msra.mxu1 %v318_v5  ;;  %291 = vst.msk [vmem:[#allocation2 + $0x20] sm:$0xff] %vm289_vm1, %v2164_v8  ;;  %v302_v21 = vld [vmem:[%s2129_s23 + $0x20] sm:$0xff]  ;;  %v303_v23 = vld [vmem:[%s2129_s23 + $0x28] sm:$0xff]  ;;  %v304_v24 = vld [vmem:[%s2129_s23 + $0x30] sm:$0xff]  ;;  %s1442_s16 = scalar_lea.sflag [#allocation7], %s2122_s0  ;;  %s1846_s2 = scalar_lea.vmem %s2619_s9, 1024 }
  0x77   : > { %1622 = vmatprep.subr.mxu0 %v317_v6  ;;  %1662 = vmatprep.subr.mxu1 %v317_v6  ;;  %v301_v25 = vld [vmem:[%s2129_s23 + $0x18] sm:$0xff]  ;;  %v2233_v27 = vld [vmem:[%s2137_s28] sm:$0xff]  ;;  %v2238_v28 = vld [vmem:[%s2137_s28 + $0x28] sm:$0xff]  ;;  %p1847_p6 = scmp.ne.s32.totalorder %s2619_s9, %s1846_s2  ;;  %p2726_p9 = scmp.ne.s32.totalorder %s2694_s6, 0 }
  0x78   : > { %1623 = vmatpush3.msra.mxu0 %v317_v6  ;;  %1678 = vmatpush3.msra.mxu1 %v317_v6  ;;  %v305_v26 = vld [vmem:[%s2129_s23 + $0x38] sm:$0xff]  ;;  %2703 = vst [vmem:[#allocation17_spill] sm:$0xff] %v2233_v27  ;;  %290 = vst.msk [vmem:[#allocation2 + $0x8] sm:$0xff] %vm289_vm1, %v2233_v27  ;;  %v2241_v29 = vld [vmem:[%s2137_s28 + $0x20] sm:$0xff]  ;;  %s1934_s4 = smov [#allocation11]  }
  0x79   : > { %1624 = vmatprep.subr.mxu0 %v316_v7  ;;  %1663 = vmatprep.subr.mxu1 %v316_v7  ;;  %2704 = vst [vmem:[#allocation18_spill] sm:$0xff] %v2238_v28  ;;  %2705 = vst [vmem:[#allocation19_spill] sm:$0xff] %v2241_v29  ;;  %v2260_v30 = vld [vmem:[%s2137_s28 + $0x18] sm:$0xff]  ;;  %v2270_v32 = vld [vmem:[%s2137_s28 + $0x10] sm:$0xff]  ;;  %p1848_p12 = pnand %p1847_p6, %p2726_p9  ;;  %s1850_s23 = sshll.u32 %s1934_s4, 4  ;;  %s1851_s23 = int_to_ptr.vmem [resolvable:$false] %s1850_s23 }
  0x7a   : > { %1625 = vmatpush3.msra.mxu0 %v316_v7  ;;  %1679 = vmatpush3.msra.mxu1 %v316_v7  ;;  %295 = vst.msk [vmem:[#allocation2 + $0x80] sm:$0xff] %vm289_vm1, %v2238_v28  ;;  %294 = vst.msk [vmem:[#allocation2 + $0x68] sm:$0xff] %vm289_vm1, %v2241_v29  ;;  %v2265_v31 = vld [vmem:[%s2137_s28 + $0x38] sm:$0xff]  ;;  %v2275_v33 = vld [vmem:[%s2137_s28 + $0x30] sm:$0xff]  ;;  %s1852_s20 = scalar_lea.vmem %s1851_s23, 2048  ;;  %p1853_p0 = scmp.lt.s32.totalorder %s2619_s9, %s1851_s23 }
  0x7b   : > { %1626 = vmatprep.subr.mxu0 %v315_v9  ;;  %1664 = vmatprep.subr.mxu1 %v315_v9  ;;  %2706 = vst [vmem:[#allocation20_spill] sm:$0xff] %v2260_v30  ;;  %293 = vst.msk [vmem:[#allocation2 + $0x50] sm:$0xff] %vm289_vm1, %v2260_v30  ;;  %p1849_p13 = pneg %p1848_p12  ;;  %p1854_p5 = scmp.lt.s32.totalorder %s1852_s20, %s1846_s2 }
  0x7c   : > { %1627 = vmatpush3.msra.mxu0 %v315_v9  ;;  %1680 = vmatpush3.msra.mxu1 %v315_v9  ;;  %2707 = vst [vmem:[#allocation21_spill] sm:$0xff] %v2265_v31  ;;  %297 = vst.msk [vmem:[#allocation2 + $0xb0] sm:$0xff] %vm289_vm1, %v2265_v31 }
  0x7d   : > { %1628 = vmatprep.subr.mxu0 %v314_v10  ;;  %1665 = vmatprep.subr.mxu1 %v314_v10  ;;  %2708 = vst [vmem:[#allocation22_spill] sm:$0xff] %v2270_v32  ;;  %292 = vst.msk [vmem:[#allocation2 + $0x38] sm:$0xff] %vm289_vm1, %v2270_v32  ;;  %v428_v37 = vld [vmem:[#allocation2 + $0x20] sm:$0xff]  ;;  %p1855_p2 = por %p1854_p5, %p1853_p0 }
  0x7e   : > { %1629 = vmatpush3.msra.mxu0 %v314_v10  ;;  %1681 = vmatpush3.msra.mxu1 %v314_v10  ;;  %2709 = vst [vmem:[#allocation23_spill] sm:$0xff] %v2275_v33  ;;  %296 = vst.msk [vmem:[#allocation2 + $0x98] sm:$0xff] %vm289_vm1, %v2275_v33 }
  0x7f   : > { %1630 = vmatprep.subr.mxu0 %v313_v11  ;;  %1666 = vmatprep.subr.mxu1 %v313_v11  ;;  %v427_v40 = vld [vmem:[#allocation2 + $0x8] sm:$0xff]  ;;  %p1856_p10 = pnand %p1855_p2, %p1849_p13 }
  0x80   : > { %1631 = vmatpush3.msra.mxu0 %v313_v11  ;;  %1682 = vmatpush3.msra.mxu1 %v313_v11 }
  0x81   : > { %1632 = vmatprep.subr.mxu0 %v312_v12  ;;  %1667 = vmatprep.subr.mxu1 %v312_v12  ;;  %v432_v41 = vld [vmem:[#allocation2 + $0x80] sm:$0xff]  ;;  %v431_v45 = vld [vmem:[#allocation2 + $0x68] sm:$0xff] }
  0x82   : > { %1633 = vmatpush3.msra.mxu0 %v312_v12  ;;  %1683 = vmatpush3.msra.mxu1 %v312_v12  ;;  %v430_v50 = vld [vmem:[#allocation2 + $0x50] sm:$0xff] }
  0x83   : > { %1634 = vmatprep.subr.mxu0 %v311_v13  ;;  %1668 = vmatprep.subr.mxu1 %v311_v13  ;;  %v434_v53 = vld [vmem:[#allocation2 + $0xb0] sm:$0xff] }
  0x84   : > { %1635 = vmatpush3.msra.mxu0 %v311_v13  ;;  %1684 = vmatpush3.msra.mxu1 %v311_v13  ;;  %v429_v58 = vld [vmem:[#allocation2 + $0x38] sm:$0xff] }
  0x85   : > { %1636 = vmatprep.subr.mxu0 %v310_v14  ;;  %1669 = vmatprep.subr.mxu1 %v310_v14  ;;  %v433_v62 = vld [vmem:[#allocation2 + $0x98] sm:$0xff] }
  0x86   : > { %1637 = vmatpush3.msra.mxu0 %v310_v14  ;;  %1685 = vmatpush3.msra.mxu1 %v310_v14 }
  0x87   : > { %1638 = vmatprep.subr.mxu0 %v309_v15  ;;  %1670 = vmatprep.subr.mxu1 %v309_v15 }
  0x88   : > { %1639 = vmatpush3.msra.mxu0 %v309_v15  ;;  %1686 = vmatpush3.msra.mxu1 %v309_v15 }
  0x89   : > { %1640 = vmatprep.subr.mxu0 %v308_v16  ;;  %1671 = vmatprep.subr.mxu1 %v308_v16 }
  0x8a   : > { %1641 = vmatpush3.msra.mxu0 %v308_v16  ;;  %1687 = vmatpush3.msra.mxu1 %v308_v16 }
  0x8b   : > { %1642 = vmatprep.subr.mxu0 %v307_v17  ;;  %1672 = vmatprep.subr.mxu1 %v307_v17 }
  0x8c   : > { %1643 = vmatpush3.msra.mxu0 %v307_v17  ;;  %1688 = vmatpush3.msra.mxu1 %v307_v17 }
  0x8d   : > { %1644 = vmatprep.subr.mxu0 %v306_v18  ;;  %1646 = vmatprep.mubr.f32.mxu0 %v298_v19 }
  0x8e   : > { %1645 = vmatpush3.msra.mxu0 %v306_v18  ;;  %1673 = vmatprep.subr.mxu1 %v306_v18 }
  0x8f   : > { %1647 = vmatmul.mubr.f32.vlgmr.msra.gmra.mxu0 %v299_v20  ;;  %1689 = vmatpush3.msra.mxu1 %v306_v18 }
  0x90   : > { %1652 = vmatprep.mubr.f32.mxu1 %v302_v21  ;;  %1649 = vmatprep.mubr.f32.mxu0 %v300_v22 }
  0x91   : > { %1653 = vmatmul.mubr.f32.vlgmr.msra.gmra.mxu1 %v303_v23  ;;  %803 = vrot.lane.b32.xlu1 %v1926_v1, %s1928_s29 }
  0x92   : > { %1655 = vmatprep.mubr.f32.mxu1 %v304_v24  ;;  %527 = vrot.lane.b32.xlu0 %v1926_v1, %s1927_s18 }
  0x93   : > { %1650 = vmatmul.mubr.f32.gmra.mxu0 %v301_v25 }
  0x95   : > { %1656 = vmatmul.mubr.f32.gmra.mxu1 %v305_v26  ;;  %807 = vrot.lane.b32.xlu1 %v1926_v1, %s1928_s29 }
  0x96   : > { %531 = vrot.lane.b32.xlu0 %v1926_v1, %s1927_s18 }
  0x99   : > { %811 = vrot.lane.b32.xlu1 %v1926_v1, %s1928_s29 }
  0x9a   : > { %535 = vrot.lane.b32.xlu0 %v1926_v1, %s1927_s18 }
  0x9d   : > { %815 = vrot.lane.b32.xlu1 %v1926_v1, %s1928_s29 }
  0x9e   : > { %539 = vrot.lane.b32.xlu0 %v1926_v1, %s1927_s18 }
  0xa1   : > { %819 = vrot.lane.b32.xlu1 %v1926_v1, %s1928_s29 }
  0xa2   : > { %543 = vrot.lane.b32.xlu0 %v1926_v1, %s1927_s18 }
  0xa5   : > { %823 = vrot.lane.b32.xlu1 %v1926_v1, %s1928_s29 }
  0xa6   : > { %620 = vrot.lane.b32.xlu0 %v1926_v1, %s1929_s10 }
  0xa9   : > { %827 = vrot.lane.b32.xlu1 %v1926_v1, %s1928_s29 }
  0xaa   : > { %624 = vrot.lane.b32.xlu0 %v1926_v1, %s1929_s10 }
  0xad   : > { %904 = vrot.lane.b32.xlu1 %v1926_v1, %s1930_s11 }
  0xae   : > { %628 = vrot.lane.b32.xlu0 %v1926_v1, %s1929_s10 }
  0xb1   : > { %908 = vrot.lane.b32.xlu1 %v1926_v1, %s1930_s11 }
  0xb2   : > { %632 = vrot.lane.b32.xlu0 %v1926_v1, %s1929_s10 }
  0xb5   : > { %912 = vrot.lane.b32.xlu1 %v1926_v1, %s1930_s11 }
  0xb6   : > { %636 = vrot.lane.b32.xlu0 %v1926_v1, %s1929_s10 }
  0xb9   : > { %916 = vrot.lane.b32.xlu1 %v1926_v1, %s1930_s11 }
  0xba   : > { %640 = vrot.lane.b32.xlu0 %v1926_v1, %s1929_s10 }
  0xbd   : > { %920 = vrot.lane.b32.xlu1 %v1926_v1, %s1930_s11 }
  0xbe   : > { %644 = vrot.lane.b32.xlu0 %v1926_v1, %s1929_s10 }
  0xc1   : > { %924 = vrot.lane.b32.xlu1 %v1926_v1, %s1930_s11 }
  0xc2   : > { %648 = vrot.lane.b32.xlu0 %v1926_v1, %s1929_s10 }
  0xc5   : > { %928 = vrot.lane.b32.xlu1 %v1926_v1, %s1930_s11 }
  0xc9   : > { %932 = vrot.lane.b32.xlu1 %v1926_v1, %s1930_s11 }
  0xcd   : > { %1009 = vrot.lane.b32.xlu1 %v1926_v1, %s1931_s21 }
  0xd1   : > { %1013 = vrot.lane.b32.xlu1 %v1926_v1, %s1931_s21 }
  0xd5   : > { %1017 = vrot.lane.b32.xlu1 %v1926_v1, %s1931_s21 }
  0xd9   : > { %1021 = vrot.lane.b32.xlu1 %v1926_v1, %s1931_s21 }
  0xdd   : > { %1025 = vrot.lane.b32.xlu1 %v1926_v1, %s1931_s21 }
  0xdf   : > { %v2279_v34 = vpop.permute.xlu1 %519  ;;  %v2337_v15 = vpop.permute.xlu0 %515 }
  0xe1   : > { %1029 = vrot.lane.b32.xlu1 %v1926_v1, %s1931_s21 }
  0xe3   : > { %v2281_v35 = vpop.permute.xlu1 %799  ;;  %v2347_v21 = vpop.permute.xlu0 %523 }
 0x103   : > { %v2283_v36 = vpop.permute.xlu1 %803 }
 0x104   : > { %v2357_v25 = vpop.permute.xlu0 %527 }
 0x107   : > { %v2285_v38 = vpop.permute.xlu1 %807 }
 0x10b   : > { %v2294_v57 = vpop.permute.xlu1 %811 }
 0x10f   : > { %v2310_v4 = vpop.permute.xlu1 %815 }
 0x113   : > { %v2317_v5 = vpop.permute.xlu1 %819 }
 0x117   : > { %v2326_v11 = vpop.permute.xlu1 %823 }
 0x11b   : > { %v2335_v14 = vpop.permute.xlu1 %827 }
 0x11c   : > { %2710 = vst [vmem:[#allocation24_spill] sm:$0xff] %v2335_v14 }
 0x11f   : > { %v2345_v20 = vpop.permute.xlu1 %904 }
 0x123   : > { %v2355_v24 = vpop.permute.xlu1 %908 }
 0x14f   : > { %v1648_v39 = vpop.f32.mrf.mxu0 }
 0x150   : > { %v436_v42 = vsub.f32 %v1648_v39, %v428_v37  ;;  %v2362_v37 = vpop.permute.xlu1 %912  ;;  %v2364_v39 = vpop.permute.xlu0 %531 }
 0x151   : > { %v388_v43 = vpop.f32.mrf.mxu0  ;;  %v1654_v44 = vpop.f32.mrf.mxu1 }
 0x152   : > { %444 = vst [vmem:[#allocation2 + $0x20] sm:$0xff] %v436_v42  ;;  %v2287_v46 = vsub.f32 %v388_v43, %v427_v40  ;;  %v440_v47 = vsub.f32 %v1654_v44, %v432_v41  ;;  %v486_v48 = vmul.f32 -0.37372494, %v436_v42  ;;  %v767_v49 = vmul.f32 -0.41045654, %v436_v42 }
 0x153   : > { %v408_v51 = vpop.f32.mrf.mxu1  ;;  %v1651_v52 = vpop.f32.mrf.mxu0  ;;  %v694_v6 = vmul.f32 -0.42348582, %v436_v42  ;;  %v2319_v7 = vmul.f32 -0.31966388, %v436_v42 }
 0x154   : > { %443 = vst [vmem:[#allocation2 + $0x8] sm:$0xff] %v2287_v46  ;;  %448 = vst [vmem:[#allocation2 + $0x80] sm:$0xff] %v440_v47  ;;  %v2290_v54 = vsub.f32 %v408_v51, %v431_v45  ;;  %521 = vrot.lane.b32.xlu1 %v486_v48, %s1927_s18  ;;  %801 = vrot.lane.b32.xlu0 %v767_v49, %s1928_s29  ;;  %v494_v55 = vmul.f32 -0.37372494, %v440_v47  ;;  %v775_v56 = vmul.f32 -0.41045654, %v440_v47  ;;  %v2372_v42 = vpop.permute.xlu1 %916  ;;  %v2374_v43 = vpop.permute.xlu0 %535 }
 0x155   : > { %v2296_v59 = vsub.f32 %v1651_v52, %v430_v50  ;;  %v1657_v60 = vpop.f32.mrf.mxu1  ;;  %v398_v61 = vpop.f32.mrf.mxu0  ;;  %v698_v9 = vmul.f32 -0.42348582, %v440_v47  ;;  %v2324_v10 = vmul.f32 -0.31966388, %v440_v47  ;;  %v484_v13 = vmul.f32 -0.37372494, %v2287_v46 }
 0x156   : > { %447 = vst [vmem:[#allocation2 + $0x68] sm:$0xff] %v2290_v54  ;;  %v2299_v63 = vsub.f32 %v1657_v60, %v434_v53  ;;  %v2302_v0 = vsub.f32 %v398_v61, %v429_v58  ;;  %v492_v12 = vmul.f32 -0.37372494, %v2290_v54  ;;  %v589_v16 = vmul.f32 -0.41045654, %v2287_v46 }
 0x157   : > { %446 = vst [vmem:[#allocation2 + $0x50] sm:$0xff] %v2296_v59  ;;  %v418_v2 = vpop.f32.mrf.mxu1  ;;  %v693_v17 = vmul.f32 -0.42348582, %v2287_v46  ;;  %v597_v18 = vmul.f32 -0.41045654, %v2290_v54 }
 0x158   : > { %537 = vrot.lane.b32.xlu1 %v494_v55, %s1927_s18  ;;  %817 = vrot.lane.b32.xlu0 %v775_v56, %s1928_s29  ;;  %450 = vst [vmem:[#allocation2 + $0xb0] sm:$0xff] %v2299_v63  ;;  %v2307_v3 = vsub.f32 %v418_v2, %v433_v62  ;;  %445 = vst [vmem:[#allocation2 + $0x38] sm:$0xff] %v2302_v0  ;;  %v697_v19 = vmul.f32 -0.42348582, %v2290_v54  ;;  %v490_v22 = vmul.f32 -0.37372494, %v2296_v59 }
 0x159   : > { %v498_v23 = vmul.f32 -0.37372494, %v2299_v63  ;;  %v595_v26 = vmul.f32 -0.41045654, %v2296_v59  ;;  %v603_v40 = vmul.f32 -0.41045654, %v2299_v63 }
 0x15a   : > { %449 = vst [vmem:[#allocation2 + $0x98] sm:$0xff] %v2307_v3  ;;  %v696_v41 = vmul.f32 -0.42348582, %v2296_v59  ;;  %v2377_v44 = vmul.f32 -0.31966388, %v2287_v46 }
 0x15b   : > { %v700_v45 = vmul.f32 -0.42348582, %v2299_v63  ;;  %v2384_v47 = vmul.f32 -0.31966388, %v2290_v54  ;;  %v488_v46 = vmul.f32 -0.37372494, %v2302_v0 }
 0x15c   : > { %626 = vrot.lane.b32.xlu1 %v767_v49, %s1929_s10  ;;  %906 = vrot.lane.b32.xlu0 %v486_v48, %s1930_s11  ;;  %v2386_v48 = vpop.permute.xlu1 %920  ;;  %v2388_v49 = vpop.permute.xlu0 %539  ;;  %v496_v50 = vmul.f32 -0.37372494, %v2307_v3  ;;  %v593_v53 = vmul.f32 -0.41045654, %v2302_v0  ;;  %v2416_v61 = vmul.f32 -0.31966388, %v2296_v59 }
 0x15d   : > { %v695_v62 = vmul.f32 -0.42348582, %v2302_v0  ;;  %v699_v59 = vmul.f32 -0.42348582, %v2307_v3 }
 0x160   : > { %642 = vrot.lane.b32.xlu1 %v775_v56, %s1929_s10  ;;  %922 = vrot.lane.b32.xlu0 %v494_v55, %s1930_s11  ;;  %v2397_v51 = vpop.permute.xlu1 %924  ;;  %v2399_v52 = vpop.permute.xlu0 %543  ;;  %v601_v56 = vmul.f32 -0.41045654, %v2307_v3 }
 0x164   : > { %711 = vrot.lane.b32.xlu1 %v694_v6, %s1932_s7  ;;  %1011 = vrot.lane.b32.xlu0 %v2319_v7, %s1931_s21  ;;  %v2404_v54 = vpop.permute.xlu1 %928  ;;  %v2406_v55 = vpop.permute.xlu0 %620 }
 0x165   : > { %2711 = vst [vmem:[#allocation25_spill] sm:$0xff] %v2404_v54 }
 0x168   : > { %719 = vrot.lane.b32.xlu1 %v698_v9, %s1932_s7  ;;  %1027 = vrot.lane.b32.xlu0 %v2324_v10, %s1931_s21  ;;  %v2413_v58 = vpop.permute.xlu1 %932  ;;  %v625_v60 = vpop.permute.xlu0 %624 }
 0x169   : > { %2712 = vst [vmem:[#allocation26_spill] sm:$0xff] %v2413_v58 }
 0x16c   : > { %533 = vrot.lane.b32.xlu1 %v492_v12, %s1927_s18  ;;  %517 = vrot.lane.b32.xlu0 %v484_v13, %s1927_s18  ;;  %v2423_v2 = vpop.permute.xlu1 %1009  ;;  %v2425_v6 = vpop.permute.xlu0 %628 }
 0x170   : > { %622 = vrot.lane.b32.xlu1 %v589_v16, %s1929_s10  ;;  %709 = vrot.lane.b32.xlu0 %v693_v17, %s1932_s7  ;;  %v1014_v9 = vpop.permute.xlu1 %1013 }
 0x174   : > { %638 = vrot.lane.b32.xlu1 %v597_v18, %s1929_s10  ;;  %717 = vrot.lane.b32.xlu0 %v697_v19, %s1932_s7 }
 0x178   : > { %529 = vrot.lane.b32.xlu1 %v490_v22, %s1927_s18  ;;  %797 = vrot.lane.b32.xlu0 %v589_v16, %s1928_s29 }
 0x17c   : > { %545 = vrot.lane.b32.xlu1 %v498_v23, %s1927_s18  ;;  %813 = vrot.lane.b32.xlu0 %v597_v18, %s1928_s29  ;;  %v2445_v18 = vmul.f32 -0.31966388, %v2302_v0 }
 0x180   : > { %634 = vrot.lane.b32.xlu1 %v595_v26, %s1929_s10  ;;  %902 = vrot.lane.b32.xlu0 %v484_v13, %s1930_s11  ;;  %v2435_v13 = vpop.permute.xlu1 %1017 }
 0x181   : > { %2713 = vst [vmem:[#allocation27_spill] sm:$0xff] %v2435_v13 }
 0x184   : > { %650 = vrot.lane.b32.xlu1 %v603_v40, %s1929_s10  ;;  %918 = vrot.lane.b32.xlu0 %v492_v12, %s1930_s11  ;;  %v2432_v12 = vpop.permute.xlu0 %632  ;;  %v2441_v17 = vpop.permute.xlu1 %1021 }
 0x188   : > { %715 = vrot.lane.b32.xlu1 %v696_v41, %s1932_s7  ;;  %1007 = vrot.lane.b32.xlu0 %v2377_v44, %s1931_s21  ;;  %v2437_v16 = vpop.permute.xlu0 %636  ;;  %v2447_v19 = vpop.permute.xlu1 %1025  ;;  %v2461_v41 = vmul.f32 -0.31966388, %v2299_v63 }
 0x18c   : > { %723 = vrot.lane.b32.xlu1 %v700_v45, %s1932_s7  ;;  %1023 = vrot.lane.b32.xlu0 %v2384_v47, %s1931_s21 }
 0x190   : > { %525 = vrot.lane.b32.xlu1 %v488_v46, %s1927_s18  ;;  %809 = vrot.lane.b32.xlu0 %v595_v26, %s1928_s29  ;;  %v1030_v26 = vpop.permute.xlu1 %1029 }
 0x194   : > { %541 = vrot.lane.b32.xlu1 %v496_v50, %s1927_s18  ;;  %825 = vrot.lane.b32.xlu0 %v603_v40, %s1928_s29 }
 0x198   : > { %630 = vrot.lane.b32.xlu1 %v593_v53, %s1929_s10  ;;  %914 = vrot.lane.b32.xlu0 %v490_v22, %s1930_s11 }
 0x19c   : > { %646 = vrot.lane.b32.xlu1 %v601_v56, %s1929_s10  ;;  %930 = vrot.lane.b32.xlu0 %v498_v23, %s1930_s11  ;;  %v2454_v23 = vmul.f32 -0.31966388, %v2307_v3 }
 0x1a0   : > { %1019 = vrot.lane.b32.xlu0 %v2416_v61, %s1931_s21  ;;  %1033 = vrot.lane.b32.xlu1 %v1926_v1, %s1931_s21 }
 0x1a4   : > { %713 = vrot.lane.b32.xlu0 %v695_v62, %s1932_s7  ;;  %1037 = vrot.lane.b32.xlu1 %v1926_v1, %s1931_s21  ;;  %v641_v1 = vpop.permute.xlu0 %640 }
 0x1a8   : > { %721 = vrot.lane.b32.xlu0 %v699_v59, %s1932_s7  ;;  %v2449_v22 = vpop.permute.xlu0 %644 }
 0x1ac   : > { %805 = vrot.lane.b32.xlu0 %v593_v53, %s1928_s29  ;;  %v2458_v40 = vpop.permute.xlu0 %648 }
 0x1b0   : > { %821 = vrot.lane.b32.xlu0 %v601_v56, %s1928_s29 }
 0x1b4   : > { %910 = vrot.lane.b32.xlu0 %v488_v46, %s1930_s11 }
 0x1b8   : > { %926 = vrot.lane.b32.xlu0 %v496_v50, %s1930_s11 }
 0x1bc   : > { %1015 = vrot.lane.b32.xlu0 %v2445_v18, %s1931_s21 }
 0x1c0   : > { %1031 = vrot.lane.b32.xlu0 %v2454_v23, %s1931_s21 }
 0x1c4   : > { %1035 = vrot.lane.b32.xlu0 %v2461_v41, %s1931_s21 }
 0x1c6   : > { %v522_v0 = vpop.permute.xlu1 %521  ;;  %v802_v45 = vpop.permute.xlu0 %801 }
 0x1c7   : > { %v549_v56 = vsel %vm547_vm2, %v2279_v34, %v522_v0  ;;  %v575_v63 = vadd.f32 %v2319_v7, %v522_v0 }
 0x1ca   : > { %v538_v46 = vpop.permute.xlu1 %537  ;;  %v818_v50 = vpop.permute.xlu0 %817 }
 0x1cb   : > { %v553_v33 = vsel %vm547_vm2, %v2374_v43, %v538_v46  ;;  %v583_v27 = vadd.f32 %v2324_v10, %v538_v46 }
 0x1ce   : > { %v627_v53 = vpop.permute.xlu1 %626  ;;  %v907_v3 = vpop.permute.xlu0 %906 }
 0x1cf   : > { %v654_v62 = vsel %vm652_vm3, %v625_v60, %v627_v53  ;;  %v680_v32 = vadd.f32 %v627_v53, %v575_v63  ;;  %v831_v60 = vsel %vm829_vm4, %v802_v45, %v2283_v36  ;;  %v936_v53 = vsel %vm934_vm5, %v907_v3, %v2355_v24 }
 0x1d0   : > { %v679_v30 = vadd.f32 %v654_v62, %v549_v56 }
 0x1d2   : > { %v643_v59 = vpop.permute.xlu1 %642  ;;  %v923_v31 = vpop.permute.xlu0 %922 }
 0x1d3   : > { %v658_v28 = vsel %vm652_vm3, %v641_v1, %v643_v59  ;;  %v688_v0 = vadd.f32 %v643_v59, %v583_v27 }
 0x1d4   : > { %v687_v7 = vadd.f32 %v658_v28, %v553_v33  ;;  %v940_v33 = vsel %vm934_vm5, %v923_v31, %v2397_v51 }
 0x1d6   : > { %v712_v29 = vpop.permute.xlu1 %711  ;;  %v1012_v8 = vpop.permute.xlu0 %1011 }
 0x1d7   : > { %v735_v34 = vadd.f32 %v712_v29, %v679_v30  ;;  %v736_v58 = vadd.f32 %v712_v29, %v680_v32  ;;  %v835_v29 = vsel %vm829_vm4, %v818_v50, %v2317_v5  ;;  %v1041_v30 = vsel %vm1039_vm6, %v1012_v8, %v1014_v9 }
 0x1d9   : > { %v856_v14 = vadd.f32 %v802_v45, %v735_v34  ;;  %v857_v43 = vadd.f32 %v831_v60, %v736_v58 }
 0x1da   : > { %v720_v56 = vpop.permute.xlu1 %719  ;;  %v1028_v62 = vpop.permute.xlu0 %1027 }
 0x1db   : > { %v961_v1 = vadd.f32 %v907_v3, %v856_v14  ;;  %v962_v63 = vadd.f32 %v936_v53, %v857_v43  ;;  %v743_v13 = vadd.f32 %v720_v56, %v687_v7  ;;  %v744_v54 = vadd.f32 %v720_v56, %v688_v0 }
 0x1dc   : > { %v1045_v14 = vsel %vm1039_vm6, %v1028_v62, %v1030_v26 }
 0x1dd   : > { %v1066_v32 = vadd.f32 %v1012_v8, %v961_v1  ;;  %v1067_v36 = vadd.f32 %v1041_v30, %v962_v63  ;;  %v864_v28 = vadd.f32 %v818_v50, %v743_v13  ;;  %v865_v27 = vadd.f32 %v835_v29, %v744_v54 }
 0x1de   : > { %v534_v10 = vpop.permute.xlu1 %533  ;;  %v518_v24 = vpop.permute.xlu0 %517 }
 0x1df   : > { %v969_v58 = vadd.f32 %v923_v31, %v864_v28  ;;  %v970_v45 = vadd.f32 %v940_v33, %v865_v27  ;;  %1100 = vrot.lane.b32.xlu0 %v1066_v32, %s1933_s8  ;;  %1102 = vrot.lane.b32.xlu1 %v1067_v36, %s1933_s8  ;;  %v548_v50 = vsel %vm547_vm2, %v2337_v15, %v518_v24 }
 0x1e0   : > { %v552_v34 = vsel %vm547_vm2, %v2364_v39, %v534_v10  ;;  %v573_v60 = vadd.f32 %v2377_v44, %v518_v24 }
 0x1e1   : > { %v1074_v5 = vadd.f32 %v1028_v62, %v969_v58  ;;  %v1075_v9 = vadd.f32 %v1045_v14, %v970_v45 }
 0x1e2   : > { %v623_v8 = vpop.permute.xlu1 %622  ;;  %v710_v46 = vpop.permute.xlu0 %709 }
 0x1e3   : > { %1116 = vrot.lane.b32.xlu0 %v1074_v5, %s1933_s8  ;;  %1118 = vrot.lane.b32.xlu1 %v1075_v9, %s1933_s8  ;;  %v653_v26 = vsel %vm652_vm3, %v2406_v55, %v623_v8  ;;  %v678_v0 = vadd.f32 %v623_v8, %v573_v60  ;;  %v581_v55 = vadd.f32 %v2384_v47, %v534_v10 }
 0x1e4   : > { %v677_v7 = vadd.f32 %v653_v26, %v548_v50 }
 0x1e5   : > { %v734_v63 = vadd.f32 %v710_v46, %v678_v0 }
 0x1e6   : > { %v639_v51 = vpop.permute.xlu1 %638  ;;  %v718_v54 = vpop.permute.xlu0 %717  ;;  %v733_v62 = vadd.f32 %v710_v46, %v677_v7 }
 0x1e7   : > { %v657_v43 = vsel %vm652_vm3, %v2437_v16, %v639_v51  ;;  %v686_v44 = vadd.f32 %v639_v51, %v581_v55 }
 0x1e8   : > { %v685_v1 = vadd.f32 %v657_v43, %v552_v34 }
 0x1e9   : > { %v742_v33 = vadd.f32 %v718_v54, %v686_v44 }
 0x1ea   : > { %v530_v13 = vpop.permute.xlu1 %529  ;;  %v798_v31 = vpop.permute.xlu0 %797  ;;  %v741_v28 = vadd.f32 %v718_v54, %v685_v1 }
 0x1eb   : > { %v830_v39 = vsel %vm829_vm4, %v798_v31, %v2281_v35  ;;  %v854_v32 = vadd.f32 %v798_v31, %v733_v62  ;;  %v551_v26 = vsel %vm547_vm2, %v2357_v25, %v530_v13  ;;  %v579_v7 = vadd.f32 %v2416_v61, %v530_v13 }
 0x1ec   : > { %v855_v36 = vadd.f32 %v830_v39, %v734_v63 }
 0x1ee   : > { %v2491_v3 = vpop.permute.xlu1 %545  ;;  %v814_v59 = vpop.permute.xlu0 %813 }
 0x1ef   : > { %v555_v15 = vsel %vm547_vm2, %v2399_v52, %v2491_v3  ;;  %v834_v35 = vsel %vm829_vm4, %v814_v59, %v2310_v4  ;;  %v862_v45 = vadd.f32 %v814_v59, %v741_v28 }
 0x1f0   : > { %v863_v5 = vadd.f32 %v834_v35, %v742_v33 }
 0x1f2   : > { %v635_v53 = vpop.permute.xlu1 %634  ;;  %v903_v56 = vpop.permute.xlu0 %902 }
 0x1f3   : > { %v935_v16 = vsel %vm934_vm5, %v903_v56, %v2345_v20  ;;  %v959_v27 = vadd.f32 %v903_v56, %v854_v32  ;;  %v684_v55 = vadd.f32 %v635_v53, %v579_v7 }
 0x1f4   : > { %v960_v10 = vadd.f32 %v935_v16, %v855_v36 }
 0x1f6   : > { %v2504_v29 = vpop.permute.xlu1 %650  ;;  %v919_v30 = vpop.permute.xlu0 %918 }
 0x1f7   : > { %v660_v52 = vsel %vm652_vm3, %v2458_v40, %v2504_v29  ;;  %v939_v20 = vsel %vm934_vm5, %v919_v30, %v2386_v48  ;;  %v967_v8 = vadd.f32 %v919_v30, %v862_v45 }
 0x1f8   : > { %v2511_v47 = vadd.f32 %v660_v52, %v555_v15  ;;  %v968_v46 = vadd.f32 %v939_v20, %v863_v5 }
 0x1fa   : > { %v716_v24 = vpop.permute.xlu1 %715  ;;  %v1008_v58 = vpop.permute.xlu0 %1007 }
 0x1fb   : > { %v1040_v14 = vsel %vm1039_vm6, %v1008_v58, %v2423_v2  ;;  %v1064_v40 = vadd.f32 %v1008_v58, %v959_v27  ;;  %v740_v39 = vadd.f32 %v716_v24, %v684_v55 }
 0x1fc   : > { %v1065_v9 = vadd.f32 %v1040_v14, %v960_v10 }
 0x1fd   : > { %1096 = vrot.lane.b32.xlu0 %v1064_v40, %s1933_s8 }
 0x1fe   : > { %v2520_v4 = vpop.permute.xlu1 %723  ;;  %1098 = vrot.lane.b32.xlu1 %v1065_v9, %s1933_s8  ;;  %v1024_v51 = vpop.permute.xlu0 %1023 }
 0x1ff   : > { %v1044_v54 = vsel %vm1039_vm6, %v1024_v51, %v2447_v19  ;;  %v1072_v31 = vadd.f32 %v1024_v51, %v967_v8  ;;  %v656_v19 = vsel %vm652_vm3, %v2432_v12, %v635_v53 }
 0x200   : > { %v1073_v48 = vadd.f32 %v1044_v54, %v968_v46  ;;  %v683_v56 = vadd.f32 %v656_v19, %v551_v26  ;;  %v587_v46 = vadd.f32 %v2461_v41, %v2491_v3  ;;  %v747_v19 = vadd.f32 %v2520_v4, %v2511_v47  ;;  %v2716_v41 = vld [vmem:[#allocation24_spill] sm:$0xff] }
 0x201   : > { %1112 = vrot.lane.b32.xlu0 %v1072_v31, %s1933_s8 }
 0x202   : > { %v526_v2 = vpop.permute.xlu1 %525  ;;  %1114 = vrot.lane.b32.xlu1 %v1073_v48, %s1933_s8  ;;  %v810_v50 = vpop.permute.xlu0 %809  ;;  %v739_v1 = vadd.f32 %v716_v24, %v683_v56  ;;  %v2714_v48 = vld [vmem:[#allocation25_spill] sm:$0xff] }
 0x203   : > { %v550_v60 = vsel %vm547_vm2, %v2347_v21, %v526_v2  ;;  %v833_v21 = vsel %vm829_vm4, %v810_v50, %v2294_v57 }
 0x204   : > { %v860_v44 = vadd.f32 %v810_v50, %v739_v1  ;;  %v2715_v50 = vld [vmem:[#allocation27_spill] sm:$0xff] }
 0x206   : > { %v542_v59 = vpop.permute.xlu1 %541  ;;  %v2529_v34 = vpop.permute.xlu0 %825 }
 0x207   : > { %v554_v15 = vsel %vm547_vm2, %v2388_v49, %v542_v59  ;;  %v861_v49 = vadd.f32 %v833_v21, %v740_v39  ;;  %v837_v3 = vsel %vm829_vm4, %v2529_v34, %v2716_v41 }
 0x20a   : > { %v631_v0 = vpop.permute.xlu1 %630  ;;  %v915_v43 = vpop.permute.xlu0 %914 }
 0x20b   : > { %v655_v25 = vsel %vm652_vm3, %v2425_v6, %v631_v0  ;;  %v938_v61 = vsel %vm934_vm5, %v915_v43, %v2372_v42  ;;  %v965_v32 = vadd.f32 %v915_v43, %v860_v44 }
 0x20c   : > { %v681_v62 = vadd.f32 %v655_v25, %v550_v60  ;;  %v966_v6 = vadd.f32 %v938_v61, %v861_v49 }
 0x20e   : > { %v647_v63 = vpop.permute.xlu1 %646  ;;  %v931_v12 = vpop.permute.xlu0 %930 }
 0x20f   : > { %v659_v13 = vsel %vm652_vm3, %v2449_v22, %v647_v63  ;;  %v577_v22 = vadd.f32 %v2445_v18, %v526_v2 }
 0x210   : > { %v689_v30 = vadd.f32 %v659_v13, %v554_v15  ;;  %v2717_v15 = vld [vmem:[#allocation26_spill] sm:$0xff] }
 0x211   : > { %v682_v33 = vadd.f32 %v631_v0, %v577_v22  ;;  %v942_v25 = vsel %vm934_vm5, %v931_v12, %v2717_v15 }
 0x212   : > { %v1020_v53 = vpop.permute.xlu0 %1019 }
 0x213   : > { %v1043_v16 = vsel %vm1039_vm6, %v1020_v53, %v2441_v17  ;;  %v1070_v52 = vadd.f32 %v1020_v53, %v965_v32  ;;  %v585_v17 = vadd.f32 %v2454_v23, %v542_v59  ;;  %v1034_v23 = vpop.permute.xlu1 %1033  ;;  %v692_v59 = vadd.f32 %v2504_v29, %v587_v46 }
 0x214   : > { %v1071_v57 = vadd.f32 %v1043_v16, %v966_v6  ;;  %v868_v29 = vadd.f32 %v2529_v34, %v747_v19 }
 0x215   : > { %1108 = vrot.lane.b32.xlu0 %v1070_v52, %s1933_s8  ;;  %v690_v40 = vadd.f32 %v647_v63, %v585_v17  ;;  %v748_v0 = vadd.f32 %v2520_v4, %v692_v59 }
 0x216   : > { %1110 = vrot.lane.b32.xlu1 %v1071_v57, %s1933_s8  ;;  %v714_v36 = vpop.permute.xlu0 %713  ;;  %v973_v39 = vadd.f32 %v931_v12, %v868_v29 }
 0x217   : > { %v737_v10 = vadd.f32 %v714_v36, %v681_v62  ;;  %v738_v58 = vadd.f32 %v714_v36, %v682_v33  ;;  %v869_v62 = vadd.f32 %v837_v3, %v748_v0  ;;  %v1038_v21 = vpop.permute.xlu1 %1037 }
 0x219   : > { %v974_v63 = vadd.f32 %v942_v25, %v869_v62 }
 0x21a   : > { %v722_v28 = vpop.permute.xlu0 %721 }
 0x21b   : > { %v745_v9 = vadd.f32 %v722_v28, %v689_v30  ;;  %v746_v51 = vadd.f32 %v722_v28, %v690_v40 }
 0x21e   : > { %v806_v42 = vpop.permute.xlu0 %805 }
 0x21f   : > { %v832_v24 = vsel %vm829_vm4, %v806_v42, %v2285_v38  ;;  %v858_v20 = vadd.f32 %v806_v42, %v737_v10 }
 0x220   : > { %v859_v5 = vadd.f32 %v832_v24, %v738_v58 }
 0x222   : > { %v822_v35 = vpop.permute.xlu0 %821 }
 0x223   : > { %v836_v18 = vsel %vm829_vm4, %v822_v35, %v2326_v11  ;;  %v866_v31 = vadd.f32 %v822_v35, %v745_v9 }
 0x224   : > { %v867_v60 = vadd.f32 %v836_v18, %v746_v51 }
 0x226   : > { %v911_v27 = vpop.permute.xlu0 %910 }
 0x227   : > { %v937_v14 = vsel %vm934_vm5, %v911_v27, %v2362_v37  ;;  %v963_v8 = vadd.f32 %v911_v27, %v858_v20 }
 0x228   : > { %v964_v38 = vadd.f32 %v937_v14, %v859_v5 }
 0x22a   : > { %v927_v45 = vpop.permute.xlu0 %926 }
 0x22b   : > { %v941_v2 = vsel %vm934_vm5, %v927_v45, %v2714_v48  ;;  %v971_v7 = vadd.f32 %v927_v45, %v866_v31 }
 0x22c   : > { %v972_v43 = vadd.f32 %v941_v2, %v867_v60 }
 0x22e   : > { %v1016_v54 = vpop.permute.xlu0 %1015 }
 0x22f   : > { %v1042_v37 = vsel %vm1039_vm6, %v1016_v54, %v2715_v50  ;;  %v1068_v26 = vadd.f32 %v1016_v54, %v963_v8 }
 0x230   : > { %v1069_v11 = vadd.f32 %v1042_v37, %v964_v38 }
 0x231   : > { %1104 = vrot.lane.b32.xlu0 %v1068_v26, %s1933_s8 }
 0x232   : > { %1106 = vrot.lane.b32.xlu1 %v1069_v11, %s1933_s8  ;;  %v1032_v56 = vpop.permute.xlu0 %1031 }
 0x233   : > { %v1046_v47 = vsel %vm1039_vm6, %v1032_v56, %v1034_v23  ;;  %v1076_v55 = vadd.f32 %v1032_v56, %v971_v7 }
 0x234   : > { %v1077_v1 = vadd.f32 %v1046_v47, %v972_v43 }
 0x235   : > { %1120 = vrot.lane.b32.xlu0 %v1076_v55, %s1933_s8 }
 0x236   : > { %1122 = vrot.lane.b32.xlu1 %v1077_v1, %s1933_s8  ;;  %v1036_v4 = vpop.permute.xlu0 %1035 }
 0x237   : > { %v1047_v44 = vsel %vm1039_vm6, %v1036_v4, %v1038_v21  ;;  %v1078_v61 = vadd.f32 %v1036_v4, %v973_v39 }
 0x238   : > { %v1079_v34 = vadd.f32 %v1047_v44, %v974_v63 }
 0x239   : > { %1124 = vrot.lane.b32.xlu0 %v1078_v61, %s1933_s8 }
 0x23a   : > { %1126 = vrot.lane.b32.xlu1 %v1079_v34, %s1933_s8 }
 0x251   : > { %v1101_v13 = vpop.permute.xlu0 %1100  ;;  %v1103_v49 = vpop.permute.xlu1 %1102 }
 0x252   : > { %v1130_v30 = vsel %vm1128_vm7, %v1101_v13, %v1103_v49 }
 0x253   : > { %1146 = vst [vmem:[#allocation3 + $0x10] sm:$0xff] %v1130_v30  ;;  %v1266_v20 = vmul.f32 -0.06117006, %v1130_v30 }
 0x255   : > { %v1117_v12 = vpop.permute.xlu0 %1116  ;;  %v1119_v32 = vpop.permute.xlu1 %1118 }
 0x256   : > { %v1134_v6 = vsel %vm1128_vm7, %v1117_v12, %v1119_v32 }
 0x257   : > { %1150 = vst [vmem:[#allocation3 + $0x50] sm:$0xff] %v1134_v6  ;;  %v1270_v4 = vmul.f32 -0.06117006, %v1134_v6 }
 0x25a   : > { %v1298_v14 = vld [vmem:[#allocation3 + $0x11] sm:$0xff] }
 0x25b   : > { %v1338_v46 = vld [vmem:[#allocation3 + $0x12] sm:$0xff]  ;;  %v1306_v41 = vmul.f32 -0.05928806, %v1298_v14 }
 0x25c   : > { %v1378_v43 = vld [vmem:[#allocation3 + $0x13] sm:$0xff]  ;;  %v1346_v55 = vmul.f32 -0.05398239, %v1338_v46 }
 0x25d   : > { %v1386_v13 = vmul.f32 -0.046173584, %v1378_v43 }
 0x25e   : > { %v1302_v62 = vld [vmem:[#allocation3 + $0x51] sm:$0xff] }
 0x25f   : > { %v1342_v49 = vld [vmem:[#allocation3 + $0x52] sm:$0xff] }
 0x260   : > { %v1350_v6 = vmul.f32 -0.05398239, %v1342_v49 }
 0x26f   : > { %v1097_v53 = vpop.permute.xlu0 %1096 }
 0x270   : > { %v1099_v16 = vpop.permute.xlu1 %1098 }
 0x271   : > { %v1129_v52 = vsel %vm1128_vm7, %v1097_v53, %v1099_v16  ;;  %v1310_v16 = vmul.f32 -0.05928806, %v1302_v62 }
 0x272   : > { %1145 = vst [vmem:[#allocation3 + $0x8] sm:$0xff] %v1129_v52  ;;  %v1265_v51 = vmul.f32 -0.06117006, %v1129_v52 }
 0x273   : > { %v1113_v57 = vpop.permute.xlu0 %1112 }
 0x274   : > { %v1115_v36 = vpop.permute.xlu1 %1114 }
 0x275   : > { %v1133_v28 = vsel %vm1128_vm7, %v1113_v57, %v1115_v36 }
 0x276   : > { %1149 = vst [vmem:[#allocation3 + $0x48] sm:$0xff] %v1133_v28  ;;  %v1269_v34 = vmul.f32 -0.06117006, %v1133_v28 }
 0x279   : > { %v1153_v42 = vld [vmem:[#allocation3 + $0x5] sm:$0xff]  ;;  %v1154_v35 = vld [vmem:[#allocation3 + $0xd] sm:$0xff] }
 0x27a   : > { %v1177_v22 = vld [vmem:[#allocation3 + $0x6] sm:$0xff]  ;;  %v1161_v27 = vmul.f32 -0.046173584, %v1153_v42  ;;  %v1162_v33 = vmul.f32 -0.046173584, %v1154_v35  ;;  %v1178_v10 = vld [vmem:[#allocation3 + $0xe] sm:$0xff] }
 0x27b   : > { %v1217_v24 = vld [vmem:[#allocation3 + $0x7] sm:$0xff]  ;;  %v1185_v17 = vmul.f32 -0.05398239, %v1177_v22  ;;  %v1186_v58 = vmul.f32 -0.05398239, %v1178_v10  ;;  %v1218_v45 = vld [vmem:[#allocation3 + $0xf] sm:$0xff] }
 0x27c   : > { %v1225_v9 = vmul.f32 -0.05928806, %v1217_v24  ;;  %v1226_v18 = vmul.f32 -0.05928806, %v1218_v45  ;;  %v1297_v38 = vld [vmem:[#allocation3 + $0x9] sm:$0xff]  ;;  %v1382_v42 = vld [vmem:[#allocation3 + $0x53] sm:$0xff] }
 0x27d   : > { %v1201_v40 = vadd.f32 %v1185_v17, %v1161_v27  ;;  %v1202_v5 = vadd.f32 %v1186_v58, %v1162_v33  ;;  %v1157_v8 = vld [vmem:[#allocation3 + $0x45] sm:$0xff]  ;;  %v1158_v54 = vld [vmem:[#allocation3 + $0x4d] sm:$0xff]  ;;  %v1305_v0 = vmul.f32 -0.05928806, %v1297_v38  ;;  %v2720_v38 = vld [vmem:[#allocation19_spill] sm:$0xff] }
 0x27e   : > { %v1181_v23 = vld [vmem:[#allocation3 + $0x46] sm:$0xff]  ;;  %v1165_v2 = vmul.f32 -0.046173584, %v1157_v8  ;;  %v1166_v50 = vmul.f32 -0.046173584, %v1158_v54  ;;  %v1182_v37 = vld [vmem:[#allocation3 + $0x4e] sm:$0xff] }
 0x27f   : > { %v1241_v31 = vadd.f32 %v1225_v9, %v1201_v40  ;;  %v1242_v48 = vadd.f32 %v1226_v18, %v1202_v5  ;;  %v1221_v26 = vld [vmem:[#allocation3 + $0x47] sm:$0xff]  ;;  %v1189_v60 = vmul.f32 -0.05398239, %v1181_v23  ;;  %v1190_v11 = vmul.f32 -0.05398239, %v1182_v37  ;;  %v1222_v19 = vld [vmem:[#allocation3 + $0x4f] sm:$0xff] }
 0x280   : > { %v1337_v59 = vld [vmem:[#allocation3 + $0xa] sm:$0xff]  ;;  %v1229_v25 = vmul.f32 -0.05928806, %v1221_v26  ;;  %v1230_v47 = vmul.f32 -0.05928806, %v1222_v19 }
 0x281   : > { %v1281_v3 = vadd.f32 %v1265_v51, %v1241_v31  ;;  %v1282_v7 = vadd.f32 %v1266_v20, %v1242_v48  ;;  %v1377_v56 = vld [vmem:[#allocation3 + $0xb] sm:$0xff]  ;;  %v1205_v29 = vadd.f32 %v1189_v60, %v1165_v2  ;;  %v1206_v15 = vadd.f32 %v1190_v11, %v1166_v50  ;;  %v2719_v20 = vld [vmem:[#allocation16_spill] sm:$0xff] }
 0x282   : > { %v1345_v39 = vmul.f32 -0.05398239, %v1337_v59  ;;  %v1301_v63 = vld [vmem:[#allocation3 + $0x49] sm:$0xff]  ;;  %v1385_v32 = vmul.f32 -0.046173584, %v1377_v56 }
 0x283   : > { %v1321_v1 = vadd.f32 %v1305_v0, %v1281_v3  ;;  %v1322_v21 = vadd.f32 %v1306_v41, %v1282_v7  ;;  %v1245_v44 = vadd.f32 %v1229_v25, %v1205_v29  ;;  %v1246_v61 = vadd.f32 %v1230_v47, %v1206_v15  ;;  %v1341_v53 = vld [vmem:[#allocation3 + $0x4a] sm:$0xff] }
 0x284   : > { %v1309_v36 = vmul.f32 -0.05928806, %v1301_v63  ;;  %v1381_v27 = vld [vmem:[#allocation3 + $0x4b] sm:$0xff]  ;;  %v1349_v28 = vmul.f32 -0.05398239, %v1341_v53 }
 0x285   : > { %v1361_v30 = vadd.f32 %v1345_v39, %v1321_v1  ;;  %v1362_v12 = vadd.f32 %v1346_v55, %v1322_v21  ;;  %v1285_v52 = vadd.f32 %v1269_v34, %v1245_v44  ;;  %v1286_v57 = vadd.f32 %v1270_v4, %v1246_v61  ;;  %v2718_v58 = vld [vmem:[#allocation17_spill] sm:$0xff]  ;;  %v2721_v23 = vld [vmem:[#allocation18_spill] sm:$0xff] }
 0x286   : > { %v1390_v5 = vmul.f32 -0.046173584, %v1382_v42  ;;  %v1389_v8 = vmul.f32 -0.046173584, %v1381_v27 }
 0x287   : > { %v1401_v35 = vadd.f32 %v1385_v32, %v1361_v30  ;;  %v1402_v22 = vadd.f32 %v1386_v13, %v1362_v12  ;;  %v1109_v33 = vpop.permute.xlu0 %1108  ;;  %v1325_v10 = vadd.f32 %v1309_v36, %v1285_v52  ;;  %v1326_v24 = vadd.f32 %v1310_v16, %v1286_v57 }
 0x288   : > { %v1111_v17 = vpop.permute.xlu1 %1110 }
 0x289   : > { %v1425_v45 = vadd.f32 %v1401_v35, %v2718_v58  ;;  %v1426_v14 = vadd.f32 %v1402_v22, %v2719_v20  ;;  %v1132_v40 = vsel %vm1128_vm7, %v1109_v33, %v1111_v17  ;;  %v1365_v9 = vadd.f32 %v1349_v28, %v1325_v10 }
 0x28a   : > { %v1366_v18 = vadd.f32 %v1350_v6, %v1326_v24  ;;  %1148 = vst [vmem:[#allocation3 + $0x30] sm:$0xff] %v1132_v40  ;;  %v1268_v4 = vmul.f32 -0.06117006, %v1132_v40 }
 0x28b   : > { %1433 = vst.msk [vmem:[%s2590_s25] sm:$0xff] %vm289_vm1, %v1425_v45  ;;  %1434 = vst.msk [vmem:[%s2590_s25 + $0x8] sm:$0xff] %vm289_vm1, %v1426_v14  ;;  %v1405_v46 = vadd.f32 %v1389_v8, %v1365_v9 }
 0x28c   : > { %v1406_v51 = vadd.f32 %v1390_v5, %v1366_v18 }
 0x28d   : > { %v1429_v54 = vadd.f32 %v1405_v46, %v2720_v38 }
 0x28e   : > { %v1430_v31 = vadd.f32 %v1406_v51, %v2721_v23 }
 0x28f   : > { %1437 = vst.msk [vmem:[%s2590_s25 + $0x20] sm:$0xff] %vm289_vm1, %v1429_v54 }
 0x290   : > { %1438 = vst.msk [vmem:[%s2590_s25 + $0x28] sm:$0xff] %vm289_vm1, %v1430_v31 }
 0x291   : > { %v1300_v55 = vld [vmem:[#allocation3 + $0x31] sm:$0xff] }
 0x292   : > { %v1340_v34 = vld [vmem:[#allocation3 + $0x32] sm:$0xff]  ;;  %v1308_v53 = vmul.f32 -0.05928806, %v1300_v55 }
 0x293   : > { %v1380_v16 = vld [vmem:[#allocation3 + $0x33] sm:$0xff]  ;;  %v1348_v58 = vmul.f32 -0.05398239, %v1340_v34 }
 0x294   : > { %v1388_v46 = vmul.f32 -0.046173584, %v1380_v16 }
 0x2a3   : > { %v1105_v48 = vpop.permute.xlu0 %1104 }
 0x2a4   : > { %v1107_v2 = vpop.permute.xlu1 %1106 }
 0x2a5   : > { %v1131_v50 = vsel %vm1128_vm7, %v1105_v48, %v1107_v2 }
 0x2a6   : > { %1147 = vst [vmem:[#allocation3 + $0x28] sm:$0xff] %v1131_v50  ;;  %v1267_v30 = vmul.f32 -0.06117006, %v1131_v50 }
 0x2a7   : > { %v1121_v37 = vpop.permute.xlu0 %1120 }
 0x2a8   : > { %v1123_v26 = vpop.permute.xlu1 %1122 }
 0x2a9   : > { %v1135_v59 = vsel %vm1128_vm7, %v1121_v37, %v1123_v26 }
 0x2aa   : > { %1151 = vst [vmem:[#allocation3 + $0x68] sm:$0xff] %v1135_v59  ;;  %v1271_v9 = vmul.f32 -0.06117006, %v1135_v59 }
 0x2ab   : > { %v1125_v60 = vpop.permute.xlu0 %1124 }
 0x2ac   : > { %v1127_v11 = vpop.permute.xlu1 %1126 }
 0x2ad   : > { %v1155_v19 = vld [vmem:[#allocation3 + $0x25] sm:$0xff]  ;;  %v1156_v41 = vld [vmem:[#allocation3 + $0x2d] sm:$0xff]  ;;  %v1136_v7 = vsel %vm1128_vm7, %v1125_v60, %v1127_v11 }
 0x2ae   : > { %v1179_v3 = vld [vmem:[#allocation3 + $0x26] sm:$0xff]  ;;  %v1163_v0 = vmul.f32 -0.046173584, %v1155_v19  ;;  %v1164_v43 = vmul.f32 -0.046173584, %v1156_v41  ;;  %v1180_v56 = vld [vmem:[#allocation3 + $0x2e] sm:$0xff] }
 0x2af   : > { %v1219_v29 = vld [vmem:[#allocation3 + $0x27] sm:$0xff]  ;;  %1152 = vst [vmem:[#allocation3 + $0x70] sm:$0xff] %v1136_v7  ;;  %v1187_v15 = vmul.f32 -0.05398239, %v1179_v3  ;;  %v1188_v25 = vmul.f32 -0.05398239, %v1180_v56 }
 0x2b0   : > { %v1220_v47 = vld [vmem:[#allocation3 + $0x2f] sm:$0xff]  ;;  %v1227_v21 = vmul.f32 -0.05928806, %v1219_v29  ;;  %v1272_v50 = vmul.f32 -0.06117006, %v1136_v7  ;;  %v2723_v29 = vld [vmem:[#allocation20_spill] sm:$0xff] }
 0x2b1   : > { %v1203_v62 = vadd.f32 %v1187_v15, %v1163_v0  ;;  %v1204_v1 = vadd.f32 %v1188_v25, %v1164_v43  ;;  %v1228_v39 = vmul.f32 -0.05928806, %v1220_v47  ;;  %v1159_v63 = vld [vmem:[#allocation3 + $0x65] sm:$0xff]  ;;  %v2722_v43 = vld [vmem:[#allocation22_spill] sm:$0xff] }
 0x2b2   : > { %v1299_v44 = vld [vmem:[#allocation3 + $0x29] sm:$0xff]  ;;  %v1167_v61 = vmul.f32 -0.046173584, %v1159_v63 }
 0x2b3   : > { %v1243_v13 = vadd.f32 %v1227_v21, %v1203_v62  ;;  %v1244_v49 = vadd.f32 %v1228_v39, %v1204_v1  ;;  %v1183_v12 = vld [vmem:[#allocation3 + $0x66] sm:$0xff]  ;;  %v1307_v22 = vmul.f32 -0.05928806, %v1299_v44 }
 0x2b4   : > { %v1223_v32 = vld [vmem:[#allocation3 + $0x67] sm:$0xff]  ;;  %v1191_v36 = vmul.f32 -0.05398239, %v1183_v12 }
 0x2b5   : > { %v1339_v52 = vld [vmem:[#allocation3 + $0x2a] sm:$0xff]  ;;  %v1283_v42 = vadd.f32 %v1267_v30, %v1243_v13  ;;  %v1284_v35 = vadd.f32 %v1268_v4, %v1244_v49  ;;  %v1231_v24 = vmul.f32 -0.05928806, %v1223_v32  ;;  %v2724_v4 = vld [vmem:[#allocation23_spill] sm:$0xff] }
 0x2b6   : > { %v1379_v57 = vld [vmem:[#allocation3 + $0x2b] sm:$0xff]  ;;  %v1207_v10 = vadd.f32 %v1191_v36, %v1167_v61  ;;  %v1347_v14 = vmul.f32 -0.05398239, %v1339_v52  ;;  %v1384_v25 = vld [vmem:[#allocation3 + $0x73] sm:$0xff] }
 0x2b7   : > { %v1160_v27 = vld [vmem:[#allocation3 + $0x6d] sm:$0xff]  ;;  %v1323_v45 = vadd.f32 %v1307_v22, %v1283_v42  ;;  %v1324_v20 = vadd.f32 %v1308_v53, %v1284_v35  ;;  %v1387_v54 = vmul.f32 -0.046173584, %v1379_v57  ;;  %v1392_v21 = vmul.f32 -0.046173584, %v1384_v25 }
 0x2b8   : > { %v1184_v33 = vld [vmem:[#allocation3 + $0x6e] sm:$0xff]  ;;  %v1168_v28 = vmul.f32 -0.046173584, %v1160_v27  ;;  %v1247_v5 = vadd.f32 %v1231_v24, %v1207_v10 }
 0x2b9   : > { %v1224_v6 = vld [vmem:[#allocation3 + $0x6f] sm:$0xff]  ;;  %v1192_v17 = vmul.f32 -0.05398239, %v1184_v33  ;;  %v1363_v51 = vadd.f32 %v1347_v14, %v1323_v45  ;;  %v1364_v38 = vadd.f32 %v1348_v58, %v1324_v20 }
 0x2ba   : > { %v1303_v40 = vld [vmem:[#allocation3 + $0x69] sm:$0xff]  ;;  %v1232_v8 = vmul.f32 -0.05928806, %v1224_v6  ;;  %v1304_v23 = vld [vmem:[#allocation3 + $0x71] sm:$0xff]  ;;  %v1287_v48 = vadd.f32 %v1271_v9, %v1247_v5 }
 0x2bb   : > { %v1208_v18 = vadd.f32 %v1192_v17, %v1168_v28  ;;  %v1343_v31 = vld [vmem:[#allocation3 + $0x6a] sm:$0xff]  ;;  %v1311_v37 = vmul.f32 -0.05928806, %v1303_v40  ;;  %v1403_v26 = vadd.f32 %v1387_v54, %v1363_v51  ;;  %v1404_v60 = vadd.f32 %v1388_v46, %v1364_v38  ;;  %v1344_v11 = vld [vmem:[#allocation3 + $0x72] sm:$0xff] }
 0x2bc   : > { %v1383_v19 = vld [vmem:[#allocation3 + $0x6b] sm:$0xff]  ;;  %v1312_v59 = vmul.f32 -0.05928806, %v1304_v23  ;;  %v1351_v0 = vmul.f32 -0.05398239, %v1343_v31 }
 0x2bd   : > { %v1248_v2 = vadd.f32 %v1232_v8, %v1208_v18  ;;  %v1327_v3 = vadd.f32 %v1311_v37, %v1287_v48  ;;  %v1427_v56 = vadd.f32 %v1403_v26, %v2722_v43  ;;  %v1428_v15 = vadd.f32 %v1404_v60, %v2723_v29  ;;  %v2725_v61 = vld [vmem:[#allocation21_spill] sm:$0xff] }
 0x2be   : > { %v1352_v7 = vmul.f32 -0.05398239, %v1344_v11  ;;  %v1391_v62 = vmul.f32 -0.046173584, %v1383_v19 }
 0x2bf   : > { %v1288_v41 = vadd.f32 %v1272_v50, %v1248_v2  ;;  %v1367_v55 = vadd.f32 %v1351_v0, %v1327_v3  ;;  %1435 = vst.msk [vmem:[%s2590_s25 + $0x10] sm:$0xff] %vm289_vm1, %v1427_v56  ;;  %1436 = vst.msk [vmem:[%s2590_s25 + $0x18] sm:$0xff] %vm289_vm1, %v1428_v15 }
 0x2c1   : > { %v1328_v47 = vadd.f32 %v1312_v59, %v1288_v41  ;;  %v1407_v39 = vadd.f32 %v1391_v62, %v1367_v55 }
 0x2c3   : > { %v1368_v1 = vadd.f32 %v1352_v7, %v1328_v47  ;;  %v1431_v44 = vadd.f32 %v1407_v39, %v2724_v4 }
 0x2c5   : > { %v1408_v63 = vadd.f32 %v1392_v21, %v1368_v1  ;;  %1439 = vst.msk [vmem:[%s2590_s25 + $0x30] sm:$0xff] %vm289_vm1, %v1431_v44 }
 0x2c7   : > { %v1432_v34 = vadd.f32 %v1408_v63, %v2725_v61 }
 0x2c9   : > { %1440 = vst.msk [vmem:[%s2590_s25 + $0x38] sm:$0xff] %vm289_vm1, %v1432_v34 }
 0x2ca   : > { %1859 = shalt.err (!%p1856_p10)
}
 0x2cb   : > { %s1860_s27 = scalar_lea.hbm %s2617_s30, 1024  ;;  %s1864_s29 = scalar_lea.hbm %s2670_s3, 2048 }
 0x2cc   : > { %p1861_p1 = scmp.ne.s32.totalorder %s2617_s30, %s1860_s27  ;;  %p1865_p7 = scmp.lt.s32.totalorder %s2617_s30, %s2670_s3 }
 0x2cd   : > { %p1866_p8 = scmp.lt.s32.totalorder %s1864_s29, %s1860_s27 }
 0x2ce   : > { %p1862_p4 = pnand %p1861_p1, %p2726_p9 }
 0x2cf   : > { %p1867_p11 = por %p1866_p8, %p1865_p7 }
 0x2d0   : > { %p1863_p3 = pneg %p1862_p4 }
 0x2d2   : > { %p1868_p6 = pnand %p1867_p11, %p1863_p3 }
 0x2d4   : > { %1871 = shalt.err (!%p1868_p6)
}
 0x2d5   : > { %s1935_s21 = smov 128   ;;  %s1936_s7 = smov 8  }
 0x2d6   : > { %1698 = dma.vmem_to_hbm [thread:$0]  (%p2726_p9), %s2619_s9, 1024, %s2617_s30, %s1442_s16, %s1935_s21, %s1935_s21, %s1936_s7  }
 0x2d7 PF: > { %s1471_s8 = sand.u32 1, %s1906_s12   ;;  %p2727_p12 = scmp.ne.s32.totalorder %s2689_s19, 0 }
 0x2d8   : > { %p2728_p13 = scmp.ge.s32.totalorder %s1918_s15, 2  ;;  %s1472_s25 = scalar_lea.sflag [#allocation7], %s1471_s8 }
 0x2da   : > { %p1712_p0 = pnand %p2728_p13, %p2727_p12 }
 0x2dc   : > { %p1713_p5 = pneg %p1712_p0 }
 0x2de   : > { %1901 = dma.done.wait (%p1713_p5), %s1472_s25, 1024  }
 0x2df   : > { %1903 = vsyncadd (%p1713_p5), %s1472_s25, 4294966272  ;;  %p19_p2 = scmp.ge.s32.totalorder %s2011_s24, 4   ;;  %s2729_s12 = smov %s1910_s13 }
 0x2e0   : > { %s2730_s13 = smov %s1914_s14  ;;  %s2731_s14 = smov %s2031_s5 }
 0x2e1   : > { %s2732_s15 = smov %s2011_s24  ;;  %21 = sbr.rel (!%p19_p2) target bundleno = 10 (0xa), region = 94 }
 0x2e6   :  { %1477 = vsyncpa [#allocation6], 1 }
 0x2e7   :  { %1479 = vsyncpa [#allocation6 + $0x1], 1 }
 0x2e8   :  { %1480 = vsyncpa [#allocation9], 1 }
 0x2e9   :  { %1482 = vsyncpa [#allocation9 + $0x1], 1 }
 0x2ea   :  { %1483 = vsyncpa [#allocation7], 1 }
 0x2eb   :  { %1485 = vsyncpa [#allocation7 + $0x1], 1 }

</bundles_post_ra>
